<compile_context>
chip_gen: v6e
topology: v6e:2x2x1
jax: 0.10.0
libtpu: 0.0.40
codegen_flags: <defaults>
</compile_context>

<pallas_src>
import jax
import jax.numpy as jnp
from jax import lax
from jax.experimental import pallas as pl
from jax.experimental.pallas import tpu as pltpu


def _round_up(n, m):
    return ((n + m - 1) // m) * m


def _make_kernel(kT, kH, kW, Cin, K, K_pad, W_pad, H_out, W_out, Mw):
    """Builds the per-output-frame kernel for the given static conv config."""

    def kernel(*refs):
        frame_refs = refs[:kT]        # kT views (1, Cin, Lp) of the padded clip
        w_ref = refs[kT]              # (Cout, K_pad) flattened + zero-padded weight
        b_ref = refs[kT + 1]          # (Cout, 1) bias
        o_ref = refs[kT + 2]          # (1, Cout, H_out*W_out) output block
        cols_ref = refs[kT + 3]       # VMEM scratch (K_pad, Mw) patch matrix

        # In-VMEM im2col: patch row block (kt, kh, kw) is the flattened padded
        # frame kt shifted by kh*W_pad + kw lanes (pure lane-offset slices).
        for kt in range(kT):
            frame = frame_refs[kt][0]                       # (Cin, Lp)
            for kh in range(kH):
                for kw in range(kW):
                    r = ((kt * kH + kh) * kW + kw) * Cin
                    off = kh * W_pad + kw
                    cols_ref[r:r + Cin, :] = frame[:, off:off + Mw]
        if K_pad > K:
            # Rows matching the zero-padded weight columns.  Rewritten every
            # step so the kernel is safe under "parallel" (megacore) sharding.
            cols_ref[K:, :] = jnp.zeros((K_pad - K, Mw), dtype=cols_ref.dtype)

        # Single MXU contraction over all kT*kH*kW*Cin taps, f32 accumulation.
        acc = jnp.dot(w_ref[...], cols_ref[...],
                      preferred_element_type=jnp.float32)    # (Cout, Mw)
        acc = (acc + b_ref[...]).astype(o_ref.dtype)

        # Compact from the wide row stride (W_pad, with kW-1 garbage lanes per
        # row) to the dense H_out*W_out layout and store.
        for h in range(H_out):
            o_ref[0, :, h * W_out:(h + 1) * W_out] = \
                acc[:, h * W_pad:h * W_pad + W_out]

    return kernel


def conv3d_wrapper_forward(x, w, b, padding=1):
    """Conv3dWrapper forward (stride=1, dilation=1, groups=1).

    x : (T, C_in, H, W)
    w : (kT, kH, kW, C_in, C_out)
    b : (C_out,)
    Returns (T_out, C_out, H_out, W_out) in the PyTorch layout.
    """
    assert x.ndim == 4
    T, C, H, W = x.shape
    kT, kH, kW, Cin, Cout = w.shape
    assert Cin == C
    p = int(padding)

    T_out = T + 2 * p - kT + 1
    H_out = H + 2 * p - kH + 1
    W_out = W + 2 * p - kW + 1
    assert T_out >= 1 and H_out >= 1 and W_out >= 1
    T_pad, H_pad, W_pad = T + 2 * p, H + 2 * p, W + 2 * p

    K = kT * kH * kW * Cin
    K_pad = max(128, _round_up(K, 8))     # aligned MXU contraction rows
    Mw = H_out * W_pad                    # "wide" (row stride W_pad) columns
    HWo = H_out * W_out
    dt = x.dtype

    # --- wrapper glue: ONE small pad pass over the input, tiny weight prep.
    #     No 27x patch tensor, no tail pad, no output transpose in HBM. ------
    x_pad = jnp.pad(x, ((p, p), (0, 0), (p, p), (p, p)))   # (T_pad,Cin,H_pad,W_pad)
    L = H_pad * W_pad
    Lp = _round_up(L + kW - 1, 128)       # room for the widest shifted slice
    x_flat = jnp.pad(x_pad.reshape(T_pad, Cin, L),
                     ((0, 0), (0, 0), (0, Lp - L)))         # (T_pad, Cin, Lp)

    w2 = jnp.transpose(w.reshape(K, Cout))                  # (Cout, K)
    w2 = jnp.pad(w2, ((0, 0), (0, K_pad - K))).astype(dt)   # (Cout, K_pad)
    b2 = b.reshape(Cout, 1).astype(dt)

    # kT views of the same padded clip, offset by the temporal tap -> no
    # overlapping-window BlockSpec needed.
    frame_specs = [
        pl.BlockSpec((1, Cin, Lp), lambda t, j=j: (t + j, 0, 0))
        for j in range(kT)
    ]

    kernel = _make_kernel(kT, kH, kW, Cin, K, K_pad, W_pad, H_out, W_out, Mw)

    out3 = pl.pallas_call(
        kernel,
        out_shape=jax.ShapeDtypeStruct((T_out, Cout, HWo), dt),
        grid_spec=pltpu.PrefetchScalarGridSpec(
            num_scalar_prefetch=0,
            grid=(T_out,),
            in_specs=frame_specs + [
                pl.BlockSpec((Cout, K_pad), lambda t: (0, 0)),   # weight, resident
                pl.BlockSpec((Cout, 1), lambda t: (0, 0)),       # bias, resident
            ],
            out_specs=pl.BlockSpec((1, Cout, HWo), lambda t: (t, 0, 0)),
            scratch_shapes=[pltpu.VMEM((K_pad, Mw), dt)],
        ),
        compiler_params=pltpu.CompilerParams(
            # Output frames are fully independent -> shard across TCs on v7x.
            dimension_semantics=("parallel",)),
    )(*([x_flat] * kT), w2, b2)

    # Contiguous reshape (free) back to the PyTorch (T_out, Cout, H_out, W_out)
    # layout; no transpose pass over the output.
    return out3.reshape(T_out, Cout, H_out, W_out)


def _reference(x, w, b, padding=1):
    """Pure-JAX reference mirroring the PyTorch module exactly."""
    x5 = jnp.transpose(x[None], (0, 2, 1, 3, 4))              # (1, C, T, H, W)
    w_oidhw = jnp.transpose(w, (4, 3, 0, 1, 2))               # OIDHW
    y = lax.conv_general_dilated(
        x5, w_oidhw,
        window_strides=(1, 1, 1),
        padding=[(padding, padding)] * 3,
        dimension_numbers=("NCDHW", "OIDHW", "NCDHW"))
    y = y + b.reshape(1, -1, 1, 1, 1)
    return jnp.transpose(y, (0, 2, 1, 3, 4))[0]               # (T, Cout, H, W)


if __name__ == "__main__":
    # Conv3d(in_channels=4, out_channels=8, kernel_size=3, padding=1)
    T, Cin, H, W = 8, 4, 16, 16
    Cout, kT, kH, kW = 8, 3, 3, 3
    pad = 1

    key = jax.random.PRNGKey(0)
    kx, kw_, kb = jax.random.split(key, 3)
    x = jax.random.normal(kx, (T, Cin, H, W), dtype=jnp.float32)
    fan_in = Cin * kT * kH * kW
    w = jax.random.normal(kw_, (kT, kH, kW, Cin, Cout), dtype=jnp.float32) / jnp.sqrt(fan_in)
    b = jax.random.normal(kb, (Cout,), dtype=jnp.float32) * 0.01

    out = conv3d_wrapper_forward(x, w, b, padding=pad)
    out = jax.block_until_ready(out)

    ref = _reference(x, w, b, padding=pad)
    assert out.shape == ref.shape == (T, Cout, H, W), (out.shape, ref.shape)
    err = float(jnp.max(jnp.abs(out - ref)))
    assert jnp.allclose(out, ref, atol=1e-4, rtol=1e-4), err

    print("KERNEL_OK")
</pallas_src>

<mosaic_0001>
module attributes {stable_mosaic.version = 11 : i64} {
  func.func @kernel(%arg0: i32, %arg1: memref<1x4x384xf32, #tpu.memory_space<vmem>>, %arg2: memref<1x4x384xf32, #tpu.memory_space<vmem>>, %arg3: memref<1x4x384xf32, #tpu.memory_space<vmem>>, %arg4: memref<8x128xf32, #tpu.memory_space<vmem>>, %arg5: memref<8x1xf32, #tpu.memory_space<vmem>>, %arg6: memref<1x8x256xf32, #tpu.memory_space<vmem>>, %arg7: memref<128x288xf32, #tpu.memory_space<vmem>>) attributes {dimension_semantics = [#tpu.dimension_semantics<parallel>], iteration_bounds = array<i64: 8>, scalar_prefetch = 0 : i64, scratch_operands = 1 : i64, tpu.core_type = #tpu.core_type<tc>, window_params = [{transform_indices = @transform_0, window_bounds = array<i64: 1, 4, 384>}, {transform_indices = @transform_1, window_bounds = array<i64: 1, 4, 384>}, {transform_indices = @transform_2, window_bounds = array<i64: 1, 4, 384>}, {pipeline_mode = #tpu.pipeline_mode<synchronous>, transform_indices = @transform_3, window_bounds = array<i64: 8, 128>}, {pipeline_mode = #tpu.pipeline_mode<synchronous>, transform_indices = @transform_4, window_bounds = array<i64: 8, 1>}, {transform_indices = @transform_5, window_bounds = array<i64: 1, 8, 256>}]} {
    %c0 = arith.constant 0 : index
    %c0_0 = arith.constant 0 : index
    %c0_1 = arith.constant 0 : index
    %0 = vector.load %arg1[%c0, %c0_0, %c0_1] : memref<1x4x384xf32, #tpu.memory_space<vmem>>, vector<1x4x384xf32>
    %1 = vector.shape_cast %0 : vector<1x4x384xf32> to vector<4x384xf32>
    %2 = vector.extract_strided_slice %1 {offsets = [0, 0], sizes = [4, 288], strides = [1, 1]} : vector<4x384xf32> to vector<4x288xf32>
    %c0_2 = arith.constant 0 : index
    %c0_3 = arith.constant 0 : index
    %3 = vector.load %arg7[%c0_2, %c0_3] : memref<128x288xf32, #tpu.memory_space<vmem>>, vector<4x288xf32>
    tpu.vector_store %arg7[%c0_2, %c0_3], %2 {strides = array<i32>} : memref<128x288xf32, #tpu.memory_space<vmem>>, vector<4x288xf32>,
    %4 = vector.extract_strided_slice %1 {offsets = [0, 1], sizes = [4, 288], strides = [1, 1]} : vector<4x384xf32> to vector<4x288xf32>
    %c4 = arith.constant 4 : index
    %c0_4 = arith.constant 0 : index
    %5 = vector.load %arg7[%c4, %c0_4] : memref<128x288xf32, #tpu.memory_space<vmem>>, vector<4x288xf32>
    tpu.vector_store %arg7[%c4, %c0_4], %4 {strides = array<i32>} : memref<128x288xf32, #tpu.memory_space<vmem>>, vector<4x288xf32>,
    %6 = vector.extract_strided_slice %1 {offsets = [0, 2], sizes = [4, 288], strides = [1, 1]} : vector<4x384xf32> to vector<4x288xf32>
    %c8 = arith.constant 8 : index
    %c0_5 = arith.constant 0 : index
    %7 = vector.load %arg7[%c8, %c0_5] : memref<128x288xf32, #tpu.memory_space<vmem>>, vector<4x288xf32>
    tpu.vector_store %arg7[%c8, %c0_5], %6 {strides = array<i32>} : memref<128x288xf32, #tpu.memory_space<vmem>>, vector<4x288xf32>,
    %8 = vector.extract_strided_slice %1 {offsets = [0, 18], sizes = [4, 288], strides = [1, 1]} : vector<4x384xf32> to vector<4x288xf32>
    %c12 = arith.constant 12 : index
    %c0_6 = arith.constant 0 : index
    %9 = vector.load %arg7[%c12, %c0_6] : memref<128x288xf32, #tpu.memory_space<vmem>>, vector<4x288xf32>
    tpu.vector_store %arg7[%c12, %c0_6], %8 {strides = array<i32>} : memref<128x288xf32, #tpu.memory_space<vmem>>, vector<4x288xf32>,
    %10 = vector.extract_strided_slice %1 {offsets = [0, 19], sizes = [4, 288], strides = [1, 1]} : vector<4x384xf32> to vector<4x288xf32>
    %c16 = arith.constant 16 : index
    %c0_7 = arith.constant 0 : index
    %11 = vector.load %arg7[%c16, %c0_7] : memref<128x288xf32, #tpu.memory_space<vmem>>, vector<4x288xf32>
    tpu.vector_store %arg7[%c16, %c0_7], %10 {strides = array<i32>} : memref<128x288xf32, #tpu.memory_space<vmem>>, vector<4x288xf32>,
    %12 = vector.extract_strided_slice %1 {offsets = [0, 20], sizes = [4, 288], strides = [1, 1]} : vector<4x384xf32> to vector<4x288xf32>
    %c20 = arith.constant 20 : index
    %c0_8 = arith.constant 0 : index
    %13 = vector.load %arg7[%c20, %c0_8] : memref<128x288xf32, #tpu.memory_space<vmem>>, vector<4x288xf32>
    tpu.vector_store %arg7[%c20, %c0_8], %12 {strides = array<i32>} : memref<128x288xf32, #tpu.memory_space<vmem>>, vector<4x288xf32>,
    %14 = vector.extract_strided_slice %1 {offsets = [0, 36], sizes = [4, 288], strides = [1, 1]} : vector<4x384xf32> to vector<4x288xf32>
    %c24 = arith.constant 24 : index
    %c0_9 = arith.constant 0 : index
    %15 = vector.load %arg7[%c24, %c0_9] : memref<128x288xf32, #tpu.memory_space<vmem>>, vector<4x288xf32>
    tpu.vector_store %arg7[%c24, %c0_9], %14 {strides = array<i32>} : memref<128x288xf32, #tpu.memory_space<vmem>>, vector<4x288xf32>,
    %16 = vector.extract_strided_slice %1 {offsets = [0, 37], sizes = [4, 288], strides = [1, 1]} : vector<4x384xf32> to vector<4x288xf32>
    %c28 = arith.constant 28 : index
    %c0_10 = arith.constant 0 : index
    %17 = vector.load %arg7[%c28, %c0_10] : memref<128x288xf32, #tpu.memory_space<vmem>>, vector<4x288xf32>
    tpu.vector_store %arg7[%c28, %c0_10], %16 {strides = array<i32>} : memref<128x288xf32, #tpu.memory_space<vmem>>, vector<4x288xf32>,
    %18 = vector.extract_strided_slice %1 {offsets = [0, 38], sizes = [4, 288], strides = [1, 1]} : vector<4x384xf32> to vector<4x288xf32>
    %c32 = arith.constant 32 : index
    %c0_11 = arith.constant 0 : index
    %19 = vector.load %arg7[%c32, %c0_11] : memref<128x288xf32, #tpu.memory_space<vmem>>, vector<4x288xf32>
    tpu.vector_store %arg7[%c32, %c0_11], %18 {strides = array<i32>} : memref<128x288xf32, #tpu.memory_space<vmem>>, vector<4x288xf32>,
    %c0_12 = arith.constant 0 : index
    %c0_13 = arith.constant 0 : index
    %c0_14 = arith.constant 0 : index
    %20 = vector.load %arg2[%c0_12, %c0_13, %c0_14] : memref<1x4x384xf32, #tpu.memory_space<vmem>>, vector<1x4x384xf32>
    %21 = vector.shape_cast %20 : vector<1x4x384xf32> to vector<4x384xf32>
    %22 = vector.extract_strided_slice %21 {offsets = [0, 0], sizes = [4, 288], strides = [1, 1]} : vector<4x384xf32> to vector<4x288xf32>
    %c36 = arith.constant 36 : index
    %c0_15 = arith.constant 0 : index
    %23 = vector.load %arg7[%c36, %c0_15] : memref<128x288xf32, #tpu.memory_space<vmem>>, vector<4x288xf32>
    tpu.vector_store %arg7[%c36, %c0_15], %22 {strides = array<i32>} : memref<128x288xf32, #tpu.memory_space<vmem>>, vector<4x288xf32>,
    %24 = vector.extract_strided_slice %21 {offsets = [0, 1], sizes = [4, 288], strides = [1, 1]} : vector<4x384xf32> to vector<4x288xf32>
    %c40 = arith.constant 40 : index
    %c0_16 = arith.constant 0 : index
    %25 = vector.load %arg7[%c40, %c0_16] : memref<128x288xf32, #tpu.memory_space<vmem>>, vector<4x288xf32>
    tpu.vector_store %arg7[%c40, %c0_16], %24 {strides = array<i32>} : memref<128x288xf32, #tpu.memory_space<vmem>>, vector<4x288xf32>,
    %26 = vector.extract_strided_slice %21 {offsets = [0, 2], sizes = [4, 288], strides = [1, 1]} : vector<4x384xf32> to vector<4x288xf32>
    %c44 = arith.constant 44 : index
    %c0_17 = arith.constant 0 : index
    %27 = vector.load %arg7[%c44, %c0_17] : memref<128x288xf32, #tpu.memory_space<vmem>>, vector<4x288xf32>
    tpu.vector_store %arg7[%c44, %c0_17], %26 {strides = array<i32>} : memref<128x288xf32, #tpu.memory_space<vmem>>, vector<4x288xf32>,
    %28 = vector.extract_strided_slice %21 {offsets = [0, 18], sizes = [4, 288], strides = [1, 1]} : vector<4x384xf32> to vector<4x288xf32>
    %c48 = arith.constant 48 : index
    %c0_18 = arith.constant 0 : index
    %29 = vector.load %arg7[%c48, %c0_18] : memref<128x288xf32, #tpu.memory_space<vmem>>, vector<4x288xf32>
    tpu.vector_store %arg7[%c48, %c0_18], %28 {strides = array<i32>} : memref<128x288xf32, #tpu.memory_space<vmem>>, vector<4x288xf32>,
    %30 = vector.extract_strided_slice %21 {offsets = [0, 19], sizes = [4, 288], strides = [1, 1]} : vector<4x384xf32> to vector<4x288xf32>
    %c52 = arith.constant 52 : index
    %c0_19 = arith.constant 0 : index
    %31 = vector.load %arg7[%c52, %c0_19] : memref<128x288xf32, #tpu.memory_space<vmem>>, vector<4x288xf32>
    tpu.vector_store %arg7[%c52, %c0_19], %30 {strides = array<i32>} : memref<128x288xf32, #tpu.memory_space<vmem>>, vector<4x288xf32>,
    %32 = vector.extract_strided_slice %21 {offsets = [0, 20], sizes = [4, 288], strides = [1, 1]} : vector<4x384xf32> to vector<4x288xf32>
    %c56 = arith.constant 56 : index
    %c0_20 = arith.constant 0 : index
    %33 = vector.load %arg7[%c56, %c0_20] : memref<128x288xf32, #tpu.memory_space<vmem>>, vector<4x288xf32>
    tpu.vector_store %arg7[%c56, %c0_20], %32 {strides = array<i32>} : memref<128x288xf32, #tpu.memory_space<vmem>>, vector<4x288xf32>,
    %34 = vector.extract_strided_slice %21 {offsets = [0, 36], sizes = [4, 288], strides = [1, 1]} : vector<4x384xf32> to vector<4x288xf32>
    %c60 = arith.constant 60 : index
    %c0_21 = arith.constant 0 : index
    %35 = vector.load %arg7[%c60, %c0_21] : memref<128x288xf32, #tpu.memory_space<vmem>>, vector<4x288xf32>
    tpu.vector_store %arg7[%c60, %c0_21], %34 {strides = array<i32>} : memref<128x288xf32, #tpu.memory_space<vmem>>, vector<4x288xf32>,
    %36 = vector.extract_strided_slice %21 {offsets = [0, 37], sizes = [4, 288], strides = [1, 1]} : vector<4x384xf32> to vector<4x288xf32>
    %c64 = arith.constant 64 : index
    %c0_22 = arith.constant 0 : index
    %37 = vector.load %arg7[%c64, %c0_22] : memref<128x288xf32, #tpu.memory_space<vmem>>, vector<4x288xf32>
    tpu.vector_store %arg7[%c64, %c0_22], %36 {strides = array<i32>} : memref<128x288xf32, #tpu.memory_space<vmem>>, vector<4x288xf32>,
    %38 = vector.extract_strided_slice %21 {offsets = [0, 38], sizes = [4, 288], strides = [1, 1]} : vector<4x384xf32> to vector<4x288xf32>
    %c68 = arith.constant 68 : index
    %c0_23 = arith.constant 0 : index
    %39 = vector.load %arg7[%c68, %c0_23] : memref<128x288xf32, #tpu.memory_space<vmem>>, vector<4x288xf32>
    tpu.vector_store %arg7[%c68, %c0_23], %38 {strides = array<i32>} : memref<128x288xf32, #tpu.memory_space<vmem>>, vector<4x288xf32>,
    %c0_24 = arith.constant 0 : index
    %c0_25 = arith.constant 0 : index
    %c0_26 = arith.constant 0 : index
    %40 = vector.load %arg3[%c0_24, %c0_25, %c0_26] : memref<1x4x384xf32, #tpu.memory_space<vmem>>, vector<1x4x384xf32>
    %41 = vector.shape_cast %40 : vector<1x4x384xf32> to vector<4x384xf32>
    %42 = vector.extract_strided_slice %41 {offsets = [0, 0], sizes = [4, 288], strides = [1, 1]} : vector<4x384xf32> to vector<4x288xf32>
    %c72 = arith.constant 72 : index
    %c0_27 = arith.constant 0 : index
    %43 = vector.load %arg7[%c72, %c0_27] : memref<128x288xf32, #tpu.memory_space<vmem>>, vector<4x288xf32>
    tpu.vector_store %arg7[%c72, %c0_27], %42 {strides = array<i32>} : memref<128x288xf32, #tpu.memory_space<vmem>>, vector<4x288xf32>,
    %44 = vector.extract_strided_slice %41 {offsets = [0, 1], sizes = [4, 288], strides = [1, 1]} : vector<4x384xf32> to vector<4x288xf32>
    %c76 = arith.constant 76 : index
    %c0_28 = arith.constant 0 : index
    %45 = vector.load %arg7[%c76, %c0_28] : memref<128x288xf32, #tpu.memory_space<vmem>>, vector<4x288xf32>
    tpu.vector_store %arg7[%c76, %c0_28], %44 {strides = array<i32>} : memref<128x288xf32, #tpu.memory_space<vmem>>, vector<4x288xf32>,
    %46 = vector.extract_strided_slice %41 {offsets = [0, 2], sizes = [4, 288], strides = [1, 1]} : vector<4x384xf32> to vector<4x288xf32>
    %c80 = arith.constant 80 : index
    %c0_29 = arith.constant 0 : index
    %47 = vector.load %arg7[%c80, %c0_29] : memref<128x288xf32, #tpu.memory_space<vmem>>, vector<4x288xf32>
    tpu.vector_store %arg7[%c80, %c0_29], %46 {strides = array<i32>} : memref<128x288xf32, #tpu.memory_space<vmem>>, vector<4x288xf32>,
    %48 = vector.extract_strided_slice %41 {offsets = [0, 18], sizes = [4, 288], strides = [1, 1]} : vector<4x384xf32> to vector<4x288xf32>
    %c84 = arith.constant 84 : index
    %c0_30 = arith.constant 0 : index
    %49 = vector.load %arg7[%c84, %c0_30] : memref<128x288xf32, #tpu.memory_space<vmem>>, vector<4x288xf32>
    tpu.vector_store %arg7[%c84, %c0_30], %48 {strides = array<i32>} : memref<128x288xf32, #tpu.memory_space<vmem>>, vector<4x288xf32>,
    %50 = vector.extract_strided_slice %41 {offsets = [0, 19], sizes = [4, 288], strides = [1, 1]} : vector<4x384xf32> to vector<4x288xf32>
    %c88 = arith.constant 88 : index
    %c0_31 = arith.constant 0 : index
    %51 = vector.load %arg7[%c88, %c0_31] : memref<128x288xf32, #tpu.memory_space<vmem>>, vector<4x288xf32>
    tpu.vector_store %arg7[%c88, %c0_31], %50 {strides = array<i32>} : memref<128x288xf32, #tpu.memory_space<vmem>>, vector<4x288xf32>,
    %52 = vector.extract_strided_slice %41 {offsets = [0, 20], sizes = [4, 288], strides = [1, 1]} : vector<4x384xf32> to vector<4x288xf32>
    %c92 = arith.constant 92 : index
    %c0_32 = arith.constant 0 : index
    %53 = vector.load %arg7[%c92, %c0_32] : memref<128x288xf32, #tpu.memory_space<vmem>>, vector<4x288xf32>
    tpu.vector_store %arg7[%c92, %c0_32], %52 {strides = array<i32>} : memref<128x288xf32, #tpu.memory_space<vmem>>, vector<4x288xf32>,
    %54 = vector.extract_strided_slice %41 {offsets = [0, 36], sizes = [4, 288], strides = [1, 1]} : vector<4x384xf32> to vector<4x288xf32>
    %c96 = arith.constant 96 : index
    %c0_33 = arith.constant 0 : index
    %55 = vector.load %arg7[%c96, %c0_33] : memref<128x288xf32, #tpu.memory_space<vmem>>, vector<4x288xf32>
    tpu.vector_store %arg7[%c96, %c0_33], %54 {strides = array<i32>} : memref<128x288xf32, #tpu.memory_space<vmem>>, vector<4x288xf32>,
    %56 = vector.extract_strided_slice %41 {offsets = [0, 37], sizes = [4, 288], strides = [1, 1]} : vector<4x384xf32> to vector<4x288xf32>
    %c100 = arith.constant 100 : index
    %c0_34 = arith.constant 0 : index
    %57 = vector.load %arg7[%c100, %c0_34] : memref<128x288xf32, #tpu.memory_space<vmem>>, vector<4x288xf32>
    tpu.vector_store %arg7[%c100, %c0_34], %56 {strides = array<i32>} : memref<128x288xf32, #tpu.memory_space<vmem>>, vector<4x288xf32>,
    %58 = vector.extract_strided_slice %41 {offsets = [0, 38], sizes = [4, 288], strides = [1, 1]} : vector<4x384xf32> to vector<4x288xf32>
    %c104 = arith.constant 104 : index
    %c0_35 = arith.constant 0 : index
    %59 = vector.load %arg7[%c104, %c0_35] : memref<128x288xf32, #tpu.memory_space<vmem>>, vector<4x288xf32>
    tpu.vector_store %arg7[%c104, %c0_35], %58 {strides = array<i32>} : memref<128x288xf32, #tpu.memory_space<vmem>>, vector<4x288xf32>,
    %cst = arith.constant 0.000000e+00 : f32
    %60 = vector.broadcast %cst : f32 to vector<20x288xf32>
    %c108 = arith.constant 108 : index
    %c0_36 = arith.constant 0 : index
    %61 = vector.load %arg7[%c108, %c0_36] : memref<128x288xf32, #tpu.memory_space<vmem>>, vector<20x288xf32>
    tpu.vector_store %arg7[%c108, %c0_36], %60 {strides = array<i32>} : memref<128x288xf32, #tpu.memory_space<vmem>>, vector<20x288xf32>,
    %c0_37 = arith.constant 0 : index
    %c0_38 = arith.constant 0 : index
    %62 = vector.load %arg4[%c0_37, %c0_38] : memref<8x128xf32, #tpu.memory_space<vmem>>, vector<8x128xf32>
    %c0_39 = arith.constant 0 : index
    %c0_40 = arith.constant 0 : index
    %63 = vector.load %arg7[%c0_39, %c0_40] : memref<128x288xf32, #tpu.memory_space<vmem>>, vector<128x288xf32>
    %cst_41 = arith.constant dense<0.000000e+00> : vector<8x288xf32>
    %64 = tpu.matmul %62, %63, %cst_41 {dimension_numbers = #tpu.dot_dimension_numbers<[1], [0], [0], [1], [0, 0, 1, 1], [], []>} : vector<8x128xf32>, vector<128x288xf32>, vector<8x288xf32> -> vector<8x288xf32>
    %c0_42 = arith.constant 0 : index
    %c0_43 = arith.constant 0 : index
    %65 = vector.load %arg5[%c0_42, %c0_43] : memref<8x1xf32, #tpu.memory_space<vmem>>, vector<8x1xf32>
    %66 = vector.broadcast %65 : vector<8x1xf32> to vector<8x288xf32>
    %67 = arith.addf %64, %66 : vector<8x288xf32>
    %68 = vector.extract_strided_slice %67 {offsets = [0, 0], sizes = [8, 16], strides = [1, 1]} : vector<8x288xf32> to vector<8x16xf32>
    %c0_44 = arith.constant 0 : index
    %c0_45 = arith.constant 0 : index
    %c0_46 = arith.constant 0 : index
    %69 = vector.load %arg6[%c0_44, %c0_45, %c0_46] : memref<1x8x256xf32, #tpu.memory_space<vmem>>, vector<1x8x16xf32>
    %70 = vector.shape_cast %69 : vector<1x8x16xf32> to vector<8x16xf32>
    %71 = vector.shape_cast %68 : vector<8x16xf32> to vector<1x8x16xf32>
    tpu.vector_store %arg6[%c0_44, %c0_45, %c0_46], %71 {strides = array<i32>} : memref<1x8x256xf32, #tpu.memory_space<vmem>>, vector<1x8x16xf32>,
    %72 = vector.extract_strided_slice %67 {offsets = [0, 18], sizes = [8, 16], strides = [1, 1]} : vector<8x288xf32> to vector<8x16xf32>
    %c0_47 = arith.constant 0 : index
    %c0_48 = arith.constant 0 : index
    %c16_49 = arith.constant 16 : index
    %73 = vector.load %arg6[%c0_47, %c0_48, %c16_49] : memref<1x8x256xf32, #tpu.memory_space<vmem>>, vector<1x8x16xf32>
    %74 = vector.shape_cast %73 : vector<1x8x16xf32> to vector<8x16xf32>
    %75 = vector.shape_cast %72 : vector<8x16xf32> to vector<1x8x16xf32>
    tpu.vector_store %arg6[%c0_47, %c0_48, %c16_49], %75 {strides = array<i32>} : memref<1x8x256xf32, #tpu.memory_space<vmem>>, vector<1x8x16xf32>,
    %76 = vector.extract_strided_slice %67 {offsets = [0, 36], sizes = [8, 16], strides = [1, 1]} : vector<8x288xf32> to vector<8x16xf32>
    %c0_50 = arith.constant 0 : index
    %c0_51 = arith.constant 0 : index
    %c32_52 = arith.constant 32 : index
    %77 = vector.load %arg6[%c0_50, %c0_51, %c32_52] : memref<1x8x256xf32, #tpu.memory_space<vmem>>, vector<1x8x16xf32>
    %78 = vector.shape_cast %77 : vector<1x8x16xf32> to vector<8x16xf32>
    %79 = vector.shape_cast %76 : vector<8x16xf32> to vector<1x8x16xf32>
    tpu.vector_store %arg6[%c0_50, %c0_51, %c32_52], %79 {strides = array<i32>} : memref<1x8x256xf32, #tpu.memory_space<vmem>>, vector<1x8x16xf32>,
    %80 = vector.extract_strided_slice %67 {offsets = [0, 54], sizes = [8, 16], strides = [1, 1]} : vector<8x288xf32> to vector<8x16xf32>
    %c0_53 = arith.constant 0 : index
    %c0_54 = arith.constant 0 : index
    %c48_55 = arith.constant 48 : index
    %81 = vector.load %arg6[%c0_53, %c0_54, %c48_55] : memref<1x8x256xf32, #tpu.memory_space<vmem>>, vector<1x8x16xf32>
    %82 = vector.shape_cast %81 : vector<1x8x16xf32> to vector<8x16xf32>
    %83 = vector.shape_cast %80 : vector<8x16xf32> to vector<1x8x16xf32>
    tpu.vector_store %arg6[%c0_53, %c0_54, %c48_55], %83 {strides = array<i32>} : memref<1x8x256xf32, #tpu.memory_space<vmem>>, vector<1x8x16xf32>,
    %84 = vector.extract_strided_slice %67 {offsets = [0, 72], sizes = [8, 16], strides = [1, 1]} : vector<8x288xf32> to vector<8x16xf32>
    %c0_56 = arith.constant 0 : index
    %c0_57 = arith.constant 0 : index
    %c64_58 = arith.constant 64 : index
    %85 = vector.load %arg6[%c0_56, %c0_57, %c64_58] : memref<1x8x256xf32, #tpu.memory_space<vmem>>, vector<1x8x16xf32>
    %86 = vector.shape_cast %85 : vector<1x8x16xf32> to vector<8x16xf32>
    %87 = vector.shape_cast %84 : vector<8x16xf32> to vector<1x8x16xf32>
    tpu.vector_store %arg6[%c0_56, %c0_57, %c64_58], %87 {strides = array<i32>} : memref<1x8x256xf32, #tpu.memory_space<vmem>>, vector<1x8x16xf32>,
    %88 = vector.extract_strided_slice %67 {offsets = [0, 90], sizes = [8, 16], strides = [1, 1]} : vector<8x288xf32> to vector<8x16xf32>
    %c0_59 = arith.constant 0 : index
    %c0_60 = arith.constant 0 : index
    %c80_61 = arith.constant 80 : index
    %89 = vector.load %arg6[%c0_59, %c0_60, %c80_61] : memref<1x8x256xf32, #tpu.memory_space<vmem>>, vector<1x8x16xf32>
    %90 = vector.shape_cast %89 : vector<1x8x16xf32> to vector<8x16xf32>
    %91 = vector.shape_cast %88 : vector<8x16xf32> to vector<1x8x16xf32>
    tpu.vector_store %arg6[%c0_59, %c0_60, %c80_61], %91 {strides = array<i32>} : memref<1x8x256xf32, #tpu.memory_space<vmem>>, vector<1x8x16xf32>,
    %92 = vector.extract_strided_slice %67 {offsets = [0, 108], sizes = [8, 16], strides = [1, 1]} : vector<8x288xf32> to vector<8x16xf32>
    %c0_62 = arith.constant 0 : index
    %c0_63 = arith.constant 0 : index
    %c96_64 = arith.constant 96 : index
    %93 = vector.load %arg6[%c0_62, %c0_63, %c96_64] : memref<1x8x256xf32, #tpu.memory_space<vmem>>, vector<1x8x16xf32>
    %94 = vector.shape_cast %93 : vector<1x8x16xf32> to vector<8x16xf32>
    %95 = vector.shape_cast %92 : vector<8x16xf32> to vector<1x8x16xf32>
    tpu.vector_store %arg6[%c0_62, %c0_63, %c96_64], %95 {strides = array<i32>} : memref<1x8x256xf32, #tpu.memory_space<vmem>>, vector<1x8x16xf32>,
    %96 = vector.extract_strided_slice %67 {offsets = [0, 126], sizes = [8, 16], strides = [1, 1]} : vector<8x288xf32> to vector<8x16xf32>
    %c0_65 = arith.constant 0 : index
    %c0_66 = arith.constant 0 : index
    %c112 = arith.constant 112 : index
    %97 = vector.load %arg6[%c0_65, %c0_66, %c112] : memref<1x8x256xf32, #tpu.memory_space<vmem>>, vector<1x8x16xf32>
    %98 = vector.shape_cast %97 : vector<1x8x16xf32> to vector<8x16xf32>
    %99 = vector.shape_cast %96 : vector<8x16xf32> to vector<1x8x16xf32>
    tpu.vector_store %arg6[%c0_65, %c0_66, %c112], %99 {strides = array<i32>} : memref<1x8x256xf32, #tpu.memory_space<vmem>>, vector<1x8x16xf32>,
    %100 = vector.extract_strided_slice %67 {offsets = [0, 144], sizes = [8, 16], strides = [1, 1]} : vector<8x288xf32> to vector<8x16xf32>
    %c0_67 = arith.constant 0 : index
    %c0_68 = arith.constant 0 : index
    %c128 = arith.constant 128 : index
    %101 = vector.load %arg6[%c0_67, %c0_68, %c128] : memref<1x8x256xf32, #tpu.memory_space<vmem>>, vector<1x8x16xf32>
    %102 = vector.shape_cast %101 : vector<1x8x16xf32> to vector<8x16xf32>
    %103 = vector.shape_cast %100 : vector<8x16xf32> to vector<1x8x16xf32>
    tpu.vector_store %arg6[%c0_67, %c0_68, %c128], %103 {strides = array<i32>} : memref<1x8x256xf32, #tpu.memory_space<vmem>>, vector<1x8x16xf32>,
    %104 = vector.extract_strided_slice %67 {offsets = [0, 162], sizes = [8, 16], strides = [1, 1]} : vector<8x288xf32> to vector<8x16xf32>
    %c0_69 = arith.constant 0 : index
    %c0_70 = arith.constant 0 : index
    %c144 = arith.constant 144 : index
    %105 = vector.load %arg6[%c0_69, %c0_70, %c144] : memref<1x8x256xf32, #tpu.memory_space<vmem>>, vector<1x8x16xf32>
    %106 = vector.shape_cast %105 : vector<1x8x16xf32> to vector<8x16xf32>
    %107 = vector.shape_cast %104 : vector<8x16xf32> to vector<1x8x16xf32>
    tpu.vector_store %arg6[%c0_69, %c0_70, %c144], %107 {strides = array<i32>} : memref<1x8x256xf32, #tpu.memory_space<vmem>>, vector<1x8x16xf32>,
    %108 = vector.extract_strided_slice %67 {offsets = [0, 180], sizes = [8, 16], strides = [1, 1]} : vector<8x288xf32> to vector<8x16xf32>
    %c0_71 = arith.constant 0 : index
    %c0_72 = arith.constant 0 : index
    %c160 = arith.constant 160 : index
    %109 = vector.load %arg6[%c0_71, %c0_72, %c160] : memref<1x8x256xf32, #tpu.memory_space<vmem>>, vector<1x8x16xf32>
    %110 = vector.shape_cast %109 : vector<1x8x16xf32> to vector<8x16xf32>
    %111 = vector.shape_cast %108 : vector<8x16xf32> to vector<1x8x16xf32>
    tpu.vector_store %arg6[%c0_71, %c0_72, %c160], %111 {strides = array<i32>} : memref<1x8x256xf32, #tpu.memory_space<vmem>>, vector<1x8x16xf32>,
    %112 = vector.extract_strided_slice %67 {offsets = [0, 198], sizes = [8, 16], strides = [1, 1]} : vector<8x288xf32> to vector<8x16xf32>
    %c0_73 = arith.constant 0 : index
    %c0_74 = arith.constant 0 : index
    %c176 = arith.constant 176 : index
    %113 = vector.load %arg6[%c0_73, %c0_74, %c176] : memref<1x8x256xf32, #tpu.memory_space<vmem>>, vector<1x8x16xf32>
    %114 = vector.shape_cast %113 : vector<1x8x16xf32> to vector<8x16xf32>
    %115 = vector.shape_cast %112 : vector<8x16xf32> to vector<1x8x16xf32>
    tpu.vector_store %arg6[%c0_73, %c0_74, %c176], %115 {strides = array<i32>} : memref<1x8x256xf32, #tpu.memory_space<vmem>>, vector<1x8x16xf32>,
    %116 = vector.extract_strided_slice %67 {offsets = [0, 216], sizes = [8, 16], strides = [1, 1]} : vector<8x288xf32> to vector<8x16xf32>
    %c0_75 = arith.constant 0 : index
    %c0_76 = arith.constant 0 : index
    %c192 = arith.constant 192 : index
    %117 = vector.load %arg6[%c0_75, %c0_76, %c192] : memref<1x8x256xf32, #tpu.memory_space<vmem>>, vector<1x8x16xf32>
    %118 = vector.shape_cast %117 : vector<1x8x16xf32> to vector<8x16xf32>
    %119 = vector.shape_cast %116 : vector<8x16xf32> to vector<1x8x16xf32>
    tpu.vector_store %arg6[%c0_75, %c0_76, %c192], %119 {strides = array<i32>} : memref<1x8x256xf32, #tpu.memory_space<vmem>>, vector<1x8x16xf32>,
    %120 = vector.extract_strided_slice %67 {offsets = [0, 234], sizes = [8, 16], strides = [1, 1]} : vector<8x288xf32> to vector<8x16xf32>
    %c0_77 = arith.constant 0 : index
    %c0_78 = arith.constant 0 : index
    %c208 = arith.constant 208 : index
    %121 = vector.load %arg6[%c0_77, %c0_78, %c208] : memref<1x8x256xf32, #tpu.memory_space<vmem>>, vector<1x8x16xf32>
    %122 = vector.shape_cast %121 : vector<1x8x16xf32> to vector<8x16xf32>
    %123 = vector.shape_cast %120 : vector<8x16xf32> to vector<1x8x16xf32>
    tpu.vector_store %arg6[%c0_77, %c0_78, %c208], %123 {strides = array<i32>} : memref<1x8x256xf32, #tpu.memory_space<vmem>>, vector<1x8x16xf32>,
    %124 = vector.extract_strided_slice %67 {offsets = [0, 252], sizes = [8, 16], strides = [1, 1]} : vector<8x288xf32> to vector<8x16xf32>
    %c0_79 = arith.constant 0 : index
    %c0_80 = arith.constant 0 : index
    %c224 = arith.constant 224 : index
    %125 = vector.load %arg6[%c0_79, %c0_80, %c224] : memref<1x8x256xf32, #tpu.memory_space<vmem>>, vector<1x8x16xf32>
    %126 = vector.shape_cast %125 : vector<1x8x16xf32> to vector<8x16xf32>
    %127 = vector.shape_cast %124 : vector<8x16xf32> to vector<1x8x16xf32>
    tpu.vector_store %arg6[%c0_79, %c0_80, %c224], %127 {strides = array<i32>} : memref<1x8x256xf32, #tpu.memory_space<vmem>>, vector<1x8x16xf32>,
    %128 = vector.extract_strided_slice %67 {offsets = [0, 270], sizes = [8, 16], strides = [1, 1]} : vector<8x288xf32> to vector<8x16xf32>
    %c0_81 = arith.constant 0 : index
    %c0_82 = arith.constant 0 : index
    %c240 = arith.constant 240 : index
    %129 = vector.load %arg6[%c0_81, %c0_82, %c240] : memref<1x8x256xf32, #tpu.memory_space<vmem>>, vector<1x8x16xf32>
    %130 = vector.shape_cast %129 : vector<1x8x16xf32> to vector<8x16xf32>
    %131 = vector.shape_cast %128 : vector<8x16xf32> to vector<1x8x16xf32>
    tpu.vector_store %arg6[%c0_81, %c0_82, %c240], %131 {strides = array<i32>} : memref<1x8x256xf32, #tpu.memory_space<vmem>>, vector<1x8x16xf32>,
    return
  }
  func.func @transform_0(%arg0: i32) -> (i32, i32, i32) {
    %c0_i32 = arith.constant 0 : i32
    %0 = arith.addi %arg0, %c0_i32 : i32
    %c0_i32_0 = arith.constant 0 : i32
    %c0_i32_1 = arith.constant 0 : i32
    %c0_i32_2 = arith.constant 0 : i32
    return %0, %c0_i32_0, %c0_i32_1 : i32, i32, i32
  }
  func.func @transform_1(%arg0: i32) -> (i32, i32, i32) {
    %c1_i32 = arith.constant 1 : i32
    %0 = arith.addi %arg0, %c1_i32 : i32
    %c0_i32 = arith.constant 0 : i32
    %c0_i32_0 = arith.constant 0 : i32
    %c0_i32_1 = arith.constant 0 : i32
    return %0, %c0_i32, %c0_i32_0 : i32, i32, i32
  }
  func.func @transform_2(%arg0: i32) -> (i32, i32, i32) {
    %c2_i32 = arith.constant 2 : i32
    %0 = arith.addi %arg0, %c2_i32 : i32
    %c0_i32 = arith.constant 0 : i32
    %c0_i32_0 = arith.constant 0 : i32
    %c0_i32_1 = arith.constant 0 : i32
    return %0, %c0_i32, %c0_i32_0 : i32, i32, i32
  }
  func.func @transform_3(%arg0: i32) -> (i32, i32) {
    %c0_i32 = arith.constant 0 : i32
    %c0_i32_0 = arith.constant 0 : i32
    %c0_i32_1 = arith.constant 0 : i32
    return %c0_i32, %c0_i32_0 : i32, i32
  }
  func.func @transform_4(%arg0: i32) -> (i32, i32) {
    %c0_i32 = arith.constant 0 : i32
    %c0_i32_0 = arith.constant 0 : i32
    %c0_i32_1 = arith.constant 0 : i32
    return %c0_i32, %c0_i32_0 : i32, i32
  }
  func.func @transform_5(%arg0: i32) -> (i32, i32, i32) {
    %c0_i32 = arith.constant 0 : i32
    %c0_i32_0 = arith.constant 0 : i32
    %c0_i32_1 = arith.constant 0 : i32
    return %arg0, %c0_i32, %c0_i32_0 : i32, i32, i32
  }
}

</mosaic_0001>

<bundles_post_ra>
// kernel: tpu_custom_call.1
= control target key start
LH: loop header
LB: loop body
LE: loop exit
PB: predicated region body
PF: predicated region fallthrough
CT: control target
= control target key end

     0   :  { %s2196_s0 = inlined_call_operand.hbm [shape: f32[10,4,384], index: 0, kind: input, shape index: {}]   ;;  %s2197_s1 = inlined_call_operand.hbm [shape: f32[10,4,384], index: 1, kind: input, shape index: {}]   ;;  %s2198_s2 = inlined_call_operand.hbm [shape: f32[10,4,384], index: 2, kind: input, shape index: {}]   ;;  %s2199_s3 = inlined_call_operand.vmem [shape: f32[8,128], index: 3, kind: input, shape index: {}]   ;;  %s2200_s4 = inlined_call_operand.vmem [shape: f32[8,1], index: 4, kind: input, shape index: {}]   ;;  %s2201_s5 = inlined_call_operand.hbm [shape: f32[8,8,256], index: 5, kind: output, shape index: {}]  }
   0x1   :  { %2216 = sst [smem:[#allocation21_spill]] %s2197_s1 }
   0x2   :  { %2217 = sst [smem:[#allocation22_spill]] %s2201_s5 }
   0x3   :  { %10 = vsyncpa [#allocation4], 0 }
   0x4   :  { %12 = vsyncpa [#allocation4 + $0x1], 0 }
   0x5   :  { %13 = vsyncpa [#allocation7], 0 }
   0x6   :  { %15 = vsyncpa [#allocation7 + $0x1], 0 }
   0x7   :  { %16 = vsyncpa [#allocation5], 0 }
   0x8   :  { %18 = vsyncpa [#allocation5 + $0x1], 0  ;;  %s1588_s18 = smov 0   ;;  %s1590_s19 = smov 0  }
   0x9   :  { %s1592_s20 = smov 0   ;;  %s1594_s21 = smov 0  }
   0xa   :  { %s1596_s22 = smov 0   ;;  %s1598_s23 = smov 0  }
   0xb   :  { %s1600_s24 = smov 0   ;;  %s1602_s25 = smov 0  }
   0xc   :  { %s1604_s26 = smov 0   ;;  %s1606_s27 = smov 0  }
   0xd LB: > { %2218 = sst [smem:[#allocation14_spill]] %s1513_s23  ;;  %s1637_s28 = sadd.s32 4294967295, %s1529_s27   ;;  %s1529_s27 = sphi %s1606_s27, %s2265_s27   ;;  %s1525_s26 = sphi %s1604_s26, %s2257_s26   ;;  %s1521_s25 = sphi %s1602_s25, %s2264_s25   ;;  %s1517_s24 = sphi %s1600_s24, %s2263_s24   ;;  %s1513_s23 = sphi %s1598_s23, %s2255_s23   ;;  %s1509_s22 = sphi %s1596_s22, %s2262_s22   ;;  %s1505_s21 = sphi %s1594_s21, %s2261_s21   ;;  %s1501_s20 = sphi %s1592_s20, %s2260_s20   ;;  %s1497_s19 = sphi %s1590_s19, %s2259_s19   ;;  %s1493_s18 = sphi %s1588_s18, %s2258_s18  }
   0xe   : > { %2219 = sst [smem:[#allocation15_spill]] %s1517_s24  ;;  %s1640_s29 = sadd.s32 1, %s1529_s27  }
   0xf   : > { %2220 = sst [smem:[#allocation16_spill]] %s1525_s26  ;;  %p2206_p0 = scmp.eq.s32.totalorder %s1529_s27, 0 }
  0x10   : > { %p2205_p1 = scmp.eq.s32.totalorder %s1637_s28, 0  ;;  %s55_s30 = sadd.s32 1, %s1640_s29 }
  0x11   : > { %s59_s6 = sadd.s32 1, %s1513_s23  ;;  %s56_s7 = ssub.s32 %s1640_s29, %s55_s30 }
  0x12   : > { %p66_p2 = scmp.ne.s32.totalorder %s1513_s23, %s1509_s22  ;;  %p57_p3 = scmp.eq.s32.totalorder %s56_s7, 0 }
  0x13   : > { %p72_p4 = scmp.ne.s32.totalorder %s1509_s22, %s1505_s21  ;;  %p2204_p7 = scmp.lt.s32.totalorder %s1529_s27, 8 }
  0x14   : > { %p68_p5 = por %p66_p2, %p2206_p0  ;;  %s1663_s10 = smul.u32 192, %s1529_s27 }
  0x15   : > { %s1653_s8 = scalar_select %p57_p3, %s1513_s23, %s59_s6  }
  0x16   : > { %p1657_p6 = por %p72_p4, %p2205_p1  ;;  %s217_s11 = sand.u32 1, %s1529_s27  }
  0x17   : > { %2221 = sst [smem:[#allocation17_spill]] %s1653_s8  ;;  %s219_s12 = sand.u32 1, %s1513_s23  }
  0x18   : > { %s2222_s9 = scalar_select %p1657_p6, 1, 0 }
  0x19   : > { %s1184_s13 = smul.u32 12, %s219_s12  ;;  %s2223_s1 = sld [smem:[#allocation21_spill]] }
  0x1a   : > { %p1675_p8 = pnand %p2204_p7, %p68_p5  ;;  %s1681_s7 = scalar_lea.sflag [#allocation7], %s217_s11 }
  0x1b   : > { %s221_s30 = scalar_lea.vmem [#allocation6], %s1184_s13 }
  0x1c   : > { %s230_s6 = sshll.u32 %s221_s30, 4  ;;  %p1325_p12 = pneg %p1675_p8  ;;  %s231_s6 = int_to_ptr.vmem [resolvable:$true] %s230_s6 }
  0x1f   : > { %s1039_s16 = scalar_lea.hbm %s2223_s1, %s1663_s10  ;;  %s1328_s8 = scalar_lea.hbm %s2223_s1, 1920 }
  0x20   : > { %s1671_s17 = scalar_lea.hbm %s1039_s16, 192  ;;  %s1351_s12 = scalar_lea.hbm %s1039_s16, 384 }
  0x21   : > { %p1324_p11 = scmp.ne.s32.totalorder %s1671_s17, %s1351_s12  ;;  %p1329_p3 = scmp.lt.s32.totalorder %s1671_s17, %s2223_s1 }
  0x22   : > { %p1330_p4 = scmp.lt.s32.totalorder %s1328_s8, %s1351_s12 }
  0x23   : > { %p1326_p13 = pnand %p1325_p12, %p1324_p11 }
  0x24   : > { %p1331_p5 = por %p1330_p4, %p1329_p3 }
  0x25   : > { %p1327_p2 = pneg %p1326_p13 }
  0x27   : > { %p1332_p7 = pnand %p1331_p5, %p1327_p2 }
  0x29   : > { %1335 = shalt.err (!%p1332_p7)
}
  0x2a   : > { %s1336_s11 = scalar_lea.vmem %s231_s6, 192  ;;  %s1531_s13 = smov [#allocation6]  }
  0x2b   : > { %p1337_p1 = scmp.ne.s32.totalorder %s231_s6, %s1336_s11  ;;  %s1341_s16 = sshll.u32 %s1531_s13, 4  ;;  %s1342_s16 = int_to_ptr.vmem [resolvable:$false] %s1341_s16 }
  0x2c   : > { %s1343_s30 = scalar_lea.vmem %s1342_s16, 384  ;;  %p1344_p11 = scmp.lt.s32.totalorder %s231_s6, %s1342_s16 }
  0x2d   : > { %p1339_p0 = pnand %p1337_p1, %p1325_p12  ;;  %p1345_p13 = scmp.lt.s32.totalorder %s1343_s30, %s1336_s11 }
  0x2f   : > { %p1340_p9 = pneg %p1339_p0  ;;  %p1346_p10 = por %p1345_p13, %p1344_p11 }
  0x31   : > { %p1347_p6 = pnand %p1346_p10, %p1340_p9 }
  0x33   : > { %1350 = shalt.err (!%p1347_p6)
}
  0x34   : > { %1203 = dma.hbm_to_vmem [thread:$0]  (!%p1675_p8), %s1671_s17, 192, %s231_s6, %s1681_s7  }
  0x35   : > { %p2225_p0 = scmp.lt.s32.totalorder %s1529_s27, 9  ;;  %p2226_p1 = scmp.ge.s32.totalorder %s1529_s27, 1 }
  0x36   : > { %s1118_s23 = sadd.s32 4294967294, %s1529_s27   ;;  %s28_s8 = ssub.s32 %s1529_s27, %s1640_s29 }
  0x37   : > { %p1701_p6 = pnand %p2226_p1, %p2225_p0  ;;  %s31_s21 = sadd.s32 1, %s1525_s26 }
  0x38   : > { %p29_p7 = scmp.eq.s32.totalorder %s28_s8, 0  ;;  %p38_p9 = scmp.ne.s32.totalorder %s1525_s26, %s1521_s25 }
  0x39   : > { %s2227_s5 = scalar_select %p1701_p6, 1, 0 }
  0x3a   : > { %p44_p10 = scmp.ne.s32.totalorder %s1521_s25, %s1517_s24  ;;  %p166_p12 = scmp.eq.s32.totalorder %s1637_s28, 7 }
  0x3b   : > { %s1715_s12 = scalar_select %p29_p7, %s1525_s26, %s31_s21  }
  0x3c   : > { %p2229_p2 = scmp.eq.s32.totalorder %s1529_s27, 0  ;;  %p2230_p4 = scmp.eq.s32.totalorder %s1637_s28, 0 }
  0x3d   : > { %2228 = sst [smem:[#allocation18_spill]] %s1715_s12  ;;  %p1725_p5 = por %p166_p12, %p38_p9 }
  0x3e   : > { %p40_p3 = por %p2229_p2, %p38_p9  ;;  %p1721_p8 = por %p2230_p4, %p44_p10 }
  0x3f   : > { %s2232_s6 = scalar_select %p1725_p5, 1, 0 }
  0x40   : > { %s2231_s17 = scalar_select %p1721_p8, 1, 0 }
  0x41   : > { %2233 = sst [smem:[#allocation19_spill]] %s2232_s6  ;;  %p172_p11 = scmp.eq.s32.totalorder %s1118_s23, 7 }
  0x42   : > { %s198_s14 = sand.u32 1, %s1525_s26   ;;  %s1734_s13 = scalar_lea.hbm %s2196_s0, %s1663_s10 }
  0x43   : > { %p1736_p13 = por %p172_p11, %p44_p10  ;;  %s1182_s30 = smul.u32 12, %s198_s14 }
  0x44   : > { %p2236_p0 = scmp.lt.s32.totalorder %s1529_s27, 8  ;;  %s199_s15 = scalar_lea.sflag [#allocation4], %s198_s14 }
  0x45   : > { %s2234_s16 = scalar_select %p1736_p13, 1, 0 }
  0x46   : > { %p1742_p1 = pnand %p2236_p0, %p40_p3  ;;  %s202_s23 = scalar_lea.vmem [#allocation3], %s1182_s30 }
  0x47   : > { %2235 = sst [smem:[#allocation20_spill]] %s2234_s16  ;;  %s210_s21 = sshll.u32 %s202_s23, 4  ;;  %s211_s21 = int_to_ptr.vmem [resolvable:$true] %s210_s21 }
  0x48   : > { %s1352_s11 = scalar_lea.hbm %s1734_s13, 192  ;;  %p1354_p9 = pneg %p1742_p1 }
  0x49   : > { %p1353_p7 = scmp.ne.s32.totalorder %s1734_s13, %s1352_s11  ;;  %s1357_s26 = scalar_lea.hbm %s2196_s0, 1920 }
  0x4a   : > { %p1358_p2 = scmp.lt.s32.totalorder %s1734_s13, %s2196_s0  ;;  %p1359_p3 = scmp.lt.s32.totalorder %s1357_s26, %s1352_s11 }
  0x4b   : > { %p1355_p12 = pnand %p1354_p9, %p1353_p7 }
  0x4c   : > { %p1360_p4 = por %p1359_p3, %p1358_p2 }
  0x4d   : > { %p1356_p10 = pneg %p1355_p12 }
  0x4f   : > { %p1361_p11 = pnand %p1360_p4, %p1356_p10 }
  0x51   : > { %1364 = shalt.err (!%p1361_p11)
}
  0x52   : > { %s1365_s30 = scalar_lea.vmem %s211_s21, 192  ;;  %s1532_s14 = smov [#allocation3]  }
  0x53   : > { %p1366_p0 = scmp.ne.s32.totalorder %s211_s21, %s1365_s30  ;;  %s1370_s23 = sshll.u32 %s1532_s14, 4  ;;  %s1371_s23 = int_to_ptr.vmem [resolvable:$false] %s1370_s23 }
  0x54   : > { %s1372_s6 = scalar_lea.vmem %s1371_s23, 384  ;;  %p1373_p7 = scmp.lt.s32.totalorder %s211_s21, %s1371_s23 }
  0x55   : > { %p1368_p13 = pnand %p1366_p0, %p1354_p9  ;;  %p1374_p12 = scmp.lt.s32.totalorder %s1372_s6, %s1365_s30 }
  0x57   : > { %p1369_p5 = pneg %p1368_p13  ;;  %p1375_p8 = por %p1374_p12, %p1373_p7 }
  0x59   : > { %p1376_p6 = pnand %p1375_p8, %p1369_p5 }
  0x5b   : > { %1379 = shalt.err (!%p1376_p6)
}
  0x5c   : > { %1200 = dma.hbm_to_vmem [thread:$0]  (!%p1742_p1), %s1734_s13, 192, %s211_s21, %s199_s15  }
  0x5d   : > { %s82_s1 = sadd.s32 2, %s1529_s27  ;;  %s83_s24 = sadd.s32 2, %s1640_s29 }
  0x5e   : > { %s84_s26 = ssub.s32 %s82_s1, %s83_s24  ;;  %s87_s12 = sadd.s32 1, %s1501_s20 }
  0x5f   : > { %p85_p6 = scmp.eq.s32.totalorder %s84_s26, 0  ;;  %p94_p8 = scmp.ne.s32.totalorder %s1501_s20, %s1497_s19 }
  0x60   : > { %p100_p5 = scmp.ne.s32.totalorder %s1497_s19, %s1493_s18  ;;  %s239_s6 = sand.u32 1, %s1501_s20  }
  0x61   : > { %s1769_s16 = scalar_select %p85_p6, %s1501_s20, %s87_s12  }
  0x62   : > { %p2238_p13 = scmp.eq.s32.totalorder %s1529_s27, 0  ;;  %p2239_p10 = scmp.eq.s32.totalorder %s1637_s28, 0 }
  0x63   : > { %s1185_s11 = smul.u32 12, %s239_s6  ;;  %s1045_s21 = scalar_lea.hbm %s2198_s2, %s1663_s10 }
  0x64   : > { %p96_p9 = por %p94_p8, %p2238_p13  ;;  %p1775_p2 = por %p100_p5, %p2239_p10 }
  0x65   : > { %p2241_p1 = scmp.lt.s32.totalorder %s1529_s27, 8  ;;  %s1789_s18 = scalar_lea.hbm %s1045_s21, 384 }
  0x66   : > { %s2240_s8 = scalar_select %p1775_p2, 1, 0 }
  0x67   : > { %p1785_p3 = pnand %p2241_p1, %p96_p9  ;;  %s241_s14 = scalar_lea.vmem [#allocation8], %s1185_s11 }
  0x68   : > { %s250_s23 = sshll.u32 %s241_s14, 4  ;;  %s1408_s1 = scalar_lea.hbm %s1045_s21, 576  ;;  %s251_s23 = int_to_ptr.vmem [resolvable:$true] %s250_s23 }
  0x69   : > { %p1381_p4 = scmp.ne.s32.totalorder %s1789_s18, %s1408_s1  ;;  %p1382_p11 = pneg %p1785_p3 }
  0x6a   : > { %s1385_s26 = scalar_lea.hbm %s2198_s2, 1920  ;;  %p1386_p12 = scmp.lt.s32.totalorder %s1789_s18, %s2198_s2 }
  0x6b   : > { %p1383_p0 = pnand %p1382_p11, %p1381_p4  ;;  %p1387_p6 = scmp.lt.s32.totalorder %s1385_s26, %s1408_s1 }
  0x6d   : > { %p1384_p7 = pneg %p1383_p0  ;;  %p1388_p8 = por %p1387_p6, %p1386_p12 }
  0x6f   : > { %p1389_p5 = pnand %p1388_p8, %p1384_p7 }
  0x71   : > { %1392 = shalt.err (!%p1389_p5)
}
  0x72   : > { %s1393_s11 = scalar_lea.vmem %s251_s23, 192  ;;  %s1533_s30 = smov [#allocation8]  }
  0x73   : > { %p1394_p13 = scmp.ne.s32.totalorder %s251_s23, %s1393_s11  ;;  %s1398_s13 = sshll.u32 %s1533_s30, 4  ;;  %s1399_s13 = int_to_ptr.vmem [resolvable:$false] %s1398_s13 }
  0x74   : > { %s1400_s21 = scalar_lea.vmem %s1399_s13, 384  ;;  %p1401_p1 = scmp.lt.s32.totalorder %s251_s23, %s1399_s13 }
  0x75   : > { %p1396_p9 = pnand %p1394_p13, %p1382_p11  ;;  %p1402_p4 = scmp.lt.s32.totalorder %s1400_s21, %s1393_s11 }
  0x77   : > { %p1397_p10 = pneg %p1396_p9  ;;  %p1403_p0 = por %p1402_p4, %p1401_p1 }
  0x79   : > { %p1404_p2 = pnand %p1403_p0, %p1397_p10 }
  0x7b   : > { %1407 = shalt.err (!%p1404_p2)
}
  0x7c   : > { %1206 = dma.hbm_to_vmem [thread:$0]  (!%p1785_p3), %s1789_s18, 192, %s251_s23, %s1681_s7  }
  0x7d   : > { %p2243_p7 = scmp.ne.s32.totalorder %s2227_s5, 0 }
  0x7e   : > { %s1808_s14 = sand.u32 (!%p2243_p7), 1, %s1521_s25   ;;  %p2244_p11 = scmp.ne.s32.totalorder (!%p2243_p7), %s2231_s17, 0 }
  0x7f   : > { %259 = sbr.rel (%p2243_p7) target bundleno = 768 (0x300), region = 40  ;;  %s262_s10 = scalar_lea.sflag (!%p2243_p7), [#allocation4], %s1808_s14 }
  0x80   : > { %s1186_s1 = smul.u32 (!%p2243_p7), 12, %s1808_s14 }
  0x82   : > { %s1812_s24 = scalar_lea.vmem (!%p2243_p7), [#allocation3], %s1186_s1 }
  0x84   : > { %1476 = dma.done.wait (%p2244_p11), %s262_s10, 192  }
  0x85   : > { %1478 = vsyncadd (%p2244_p11), %s262_s10, 4294967104  ;;  %s270_s7 = sand.u32 1, %s1637_s28   ;;  %s272_s5 = sand.u32 1, %s1509_s22  }
  0x86   : > { %s1820_s15 = smul.u32 12, %s272_s5  ;;  %s271_s18 = scalar_lea.sflag [#allocation7], %s270_s7 }
  0x87   : > { %p2245_p2 = scmp.ne.s32.totalorder %s2222_s9, 0 }
  0x88   : > { %s274_s23 = scalar_lea.vmem [#allocation6], %s1820_s15 }
  0x89   : > { %1480 = dma.done.wait (%p2245_p2), %s271_s18, 192  }
  0x8a   : > { %1482 = vsyncadd (%p2245_p2), %s271_s18, 4294967104  ;;  %s281_s26 = sand.u32 1, %s1497_s19   ;;  %p2246_p3 = scmp.ne.s32.totalorder %s2240_s8, 0 }
  0x8b   : > { %s1188_s17 = smul.u32 12, %s281_s26 }
  0x8d   : > { %s283_s12 = scalar_lea.vmem [#allocation8], %s1188_s17 }
  0x8e   : > { %1484 = dma.done.wait (%p2246_p3), %s271_s18, 192  }
  0x8f   : > { %1486 = vsyncadd (%p2246_p3), %s271_s18, 4294967104  ;;  %vm348_vm0 = vcmask 261124   ;;  %v1534_v0 = vmov 0.0   ;;  %vm707_vm1 = vcmask 261120   ;;  %vm330_vm2 = vcmask 257024   ;;  %v579_v2 = vld [vmem:[%s283_s12] sm:$0xff] }
  0x90   : > { %1147 = vmatprep.subr.mxu1 %v1534_v0  ;;  %702 = vst [vmem:[#allocation2 + $0x138] sm:$0xf0] %v1534_v0  ;;  %703 = vst [vmem:[#allocation2 + $0x140] sm:$0xf0] %v1534_v0  ;;  %767 = vmatprep.subr.mxu0 %v1534_v0  ;;  %v580_v1 = vld [vmem:[%s283_s12 + $0x8] sm:$0xf]  ;;  %v583_v4 = vcombine.high %v579_v2, %v579_v2  ;;  %v588_v14 = vcombine.low %v579_v2, %v579_v2 }
  0x91   : > { %704 = vst.msk [vmem:[#allocation2 + $0x148] sm:$0xf0] %vm348_vm0, %v1534_v0  ;;  %768 = vmatpush1.msra.mxu0 %v1534_v0  ;;  %831 = vmatprep.mubr.f32.mxu0 %v1534_v0  ;;  %v1846_v3 = vld [vmem:[%s274_s23 + $0x8] sm:$0xf]  ;;  %s1535_s9 = smov 90   ;;  %v1853_v5 = vld [vmem:[%s274_s23] sm:$0xff]  ;;  %v589_v13 = vcombine.low %v580_v1, %v580_v1 }
  0x92   : > { %711 = vst.msk [vmem:[#allocation2 + $0x178] sm:$0xff] %vm707_vm1, %v1534_v0  ;;  %708 = vst.msk [vmem:[#allocation2 + $0x160] sm:$0xff] %vm707_vm1, %v1534_v0  ;;  %769 = vmatprep.subr.mxu0 %v1534_v0  ;;  %692 = vrot.lane.b32.xlu0 %v580_v1, %s1535_s9  ;;  %v1856_v6 = vld [vmem:[%s1812_s24 + $0x8] sm:$0xf]  ;;  %v1861_v7 = vcombine.low %v1846_v3, %v1846_v3  ;;  %v1865_v8 = vcombine.low %v1853_v5, %v1853_v5  ;;  %v1870_v9 = vld [vmem:[%s1812_s24] sm:$0xff]  ;;  %s1536_s8 = smov 92  }
  0x93   : > { %770 = vmatpush1.msra.mxu0 %v1534_v0  ;;  %587 = vst.msk [vmem:[#allocation2 + $0xe8] sm:$0xf] %vm330_vm2, %v580_v1  ;;  %688 = vrot.lane.b32.xlu1 %v579_v2, %s1535_s9  ;;  %585 = vst [vmem:[#allocation2 + $0xd8] sm:$0xf] %v579_v2  ;;  %v1874_v11 = vcombine.high %v1870_v9, %v1870_v9  ;;  %s1537_s6 = smov 91   ;;  %s1538_s11 = smov 109   ;;  %v466_v15 = vcombine.high %v1853_v5, %v1853_v5 }
  0x94   : > { %464 = vst [vmem:[#allocation2 + $0x68] sm:$0xf0] %v1853_v5  ;;  %331 = vst.msk [vmem:[#allocation2 + $0x10] sm:$0xf] %vm330_vm2, %v1856_v6  ;;  %s1539_s30 = smov 108   ;;  %s1540_s13 = smov 126   ;;  %v1965_v16 = vcombine.low %v1856_v6, %v1856_v6  ;;  %v1973_v17 = vcombine.low %v1870_v9, %v1870_v9 }
  0x95   : > { %586 = vst [vmem:[#allocation2 + $0xe0] sm:$0xf] %v583_v4  ;;  %328 = vst [vmem:[#allocation2] sm:$0xf] %v1870_v9  ;;  %s1541_s21 = smov 110   ;;  %s1542_s1 = smov 127  }
  0x96   : > { %465 = vst.msk [vmem:[#allocation2 + $0x70] sm:$0xf0] %vm348_vm0, %v1861_v7  ;;  %463 = vst [vmem:[#allocation2 + $0x60] sm:$0xf0] %v1865_v8  ;;  %664 = vrot.lane.b32.xlu0 %v580_v1, %s1536_s8  ;;  %vm416_vm3 = vcmask 752640   ;;  %vm446_vm4 = vcmask 736256  }
  0x97   : > { %676 = vrot.lane.b32.xlu1 %v579_v2, %s1537_s6  ;;  %329 = vst [vmem:[#allocation2 + $0x8] sm:$0xf] %v1874_v11  ;;  %vm431_vm5 = vcmask 744448   ;;  %vm386_vm6 = vcmask 891904   ;;  %vm401_vm7 = vcmask 883712   ;;  %vm1543_vm8 = vmmov 0  }
  0x98   : > { %1179 = vmatprep.mubr.msk.f32.mxu1 %vm1543_vm8, %v1534_v0  ;;  %v1544_v49 = vmov 0   ;;  %v761_v50 = vld [vmem:[%s2200_s4] sm:$0xff]  ;;  %vm356_vm9 = vcmask 1031168   ;;  %vm371_vm10 = vcmask 900096   ;;  %vm340_vm11 = vcmask 1039360   ;;  %s1123_s15 = sshll.u32 %s1808_s14, 4 }
  0x99   : > { %v760_v10 = vld [vmem:[#allocation2 + $0x178] sm:$0xff]  ;;  %v757_v12 = vld [vmem:[#allocation2 + $0x160] sm:$0xff]  ;;  %1316 = vset.pattern.permute.xlu0 %v1544_v49  ;;  %vm908_vm12 = vcmask 130048   ;;  %s1545_s18 = smov 100   ;;  %s2102_s23 = scalar_lea.vmem [#allocation9], %s1123_s15  ;;  %vm914_vm13 = vcmask 261248  }
  0x9a   : > { %1148 = vmatpush3.msra.mxu1 %v760_v10  ;;  %690 = vrot.lane.b32.xlu0 %v583_v4, %s1535_s9  ;;  %s1546_s26 = smov 114   ;;  %s1547_s17 = smov 124   ;;  %vm919_vm14 = vcmask 392448   ;;  %vm924_vm15 = vcmask 523648   ;;  %vm934_vm1 = vcmask 786048  }
  0x9b   : > { %1149 = vmatprep.subr.mxu1 %v1534_v0  ;;  %662 = vrot.lane.b32.xlu1 %v583_v4, %s1536_s8  ;;  %s1548_s12 = smov 122   ;;  %s1555_s10 = smov 112  }
  0x9c   : > { %1150 = vmatpush3.msra.mxu1 %v757_v12  ;;  %s1129_s24 = sshll.u32 %s1637_s28, 8  ;;  %s1003_s7 = sshll.u32 %s2102_s23, 4  ;;  %s1004_s7 = int_to_ptr.vmem [resolvable:$true] %s1003_s7 }
  0x9d   : > { %1151 = vmatprep.subr.mxu1 %v1534_v0  ;;  %s1557_s28 = smov [#allocation9]  }
  0x9e   : > { %678 = vrot.lane.b32.xlu0 %v589_v13, %s1537_s6 }
  0x9f   : > { %660 = vrot.lane.b32.xlu1 %v579_v2, %s1536_s8 }
  0xa2   : > { %674 = vrot.lane.b32.xlu0 %v588_v14, %s1537_s6 }
  0xa3   : > { %634 = vrot.lane.b32.xlu1 %v583_v4, %s1538_s11 }
  0xa6   : > { %636 = vrot.lane.b32.xlu0 %v580_v1, %s1538_s11 }
  0xa7   : > { %648 = vrot.lane.b32.xlu1 %v579_v2, %s1539_s30 }
  0xaa   : > { %650 = vrot.lane.b32.xlu0 %v589_v13, %s1539_s30 }
  0xab   : > { %632 = vrot.lane.b32.xlu1 %v579_v2, %s1538_s11 }
  0xae   : > { %646 = vrot.lane.b32.xlu0 %v588_v14, %s1539_s30 }
  0xaf   : > { %606 = vrot.lane.b32.xlu1 %v583_v4, %s1540_s13 }
  0xb2   : > { %608 = vrot.lane.b32.xlu0 %v580_v1, %s1540_s13 }
  0xb3   : > { %620 = vrot.lane.b32.xlu1 %v579_v2, %s1541_s21 }
  0xb6   : > { %622 = vrot.lane.b32.xlu0 %v589_v13, %s1541_s21 }
  0xb7   : > { %604 = vrot.lane.b32.xlu1 %v579_v2, %s1540_s13 }
  0xba   : > { %618 = vrot.lane.b32.xlu0 %v588_v14, %s1541_s21 }
  0xbb   : > { %592 = vrot.lane.b32.xlu1 %v579_v2, %s1542_s1 }
  0xbe   : > { %594 = vrot.lane.b32.xlu0 %v589_v13, %s1542_s1 }
  0xbf   : > { %590 = vrot.lane.b32.xlu1 %v588_v14, %s1542_s1 }
  0xc2   : > { %553 = vrot.lane.b32.xlu0 %v466_v15, %s1537_s6 }
  0xc3   : > { %555 = vrot.lane.b32.xlu1 %v1846_v3, %s1537_s6 }
  0xc6   : > { %567 = vrot.lane.b32.xlu0 %v1853_v5, %s1535_s9 }
  0xc7   : > { %569 = vrot.lane.b32.xlu1 %v1861_v7, %s1535_s9 }
  0xca   : > { %551 = vrot.lane.b32.xlu0 %v1853_v5, %s1537_s6 }
  0xcb   : > { %565 = vrot.lane.b32.xlu1 %v1865_v8, %s1535_s9 }
  0xce   : > { %525 = vrot.lane.b32.xlu0 %v466_v15, %s1539_s30 }
  0xcf   : > { %527 = vrot.lane.b32.xlu1 %v1846_v3, %s1539_s30 }
  0xd2   : > { %539 = vrot.lane.b32.xlu0 %v1853_v5, %s1536_s8 }
  0xd3   : > { %541 = vrot.lane.b32.xlu1 %v1861_v7, %s1536_s8 }
  0xd6   : > { %523 = vrot.lane.b32.xlu0 %v1853_v5, %s1539_s30 }
  0xd7   : > { %537 = vrot.lane.b32.xlu1 %v1865_v8, %s1536_s8 }
  0xda   : > { %497 = vrot.lane.b32.xlu0 %v466_v15, %s1541_s21 }
  0xdb   : > { %499 = vrot.lane.b32.xlu1 %v1846_v3, %s1541_s21 }
  0xde   : > { %511 = vrot.lane.b32.xlu0 %v1853_v5, %s1538_s11 }
  0xdf   : > { %513 = vrot.lane.b32.xlu1 %v1861_v7, %s1538_s11 }
  0xe2   : > { %495 = vrot.lane.b32.xlu0 %v1853_v5, %s1541_s21 }
  0xe3   : > { %509 = vrot.lane.b32.xlu1 %v1865_v8, %s1538_s11 }
  0xe6   : > { %469 = vrot.lane.b32.xlu0 %v466_v15, %s1542_s1 }
  0xe7   : > { %471 = vrot.lane.b32.xlu1 %v1846_v3, %s1542_s1 }
  0xea   : > { %483 = vrot.lane.b32.xlu0 %v1853_v5, %s1540_s13 }
  0xeb   : > { %485 = vrot.lane.b32.xlu1 %v1861_v7, %s1540_s13 }
  0xee   : > { %467 = vrot.lane.b32.xlu0 %v1853_v5, %s1542_s1 }
  0xef   : > { %481 = vrot.lane.b32.xlu1 %v1865_v8, %s1540_s13 }
  0xf2   : > { %442 = vrot.lane.b32.xlu0 %v1874_v11, %s1535_s9 }
  0xf3   : > { %444 = vrot.lane.b32.xlu1 %v1856_v6, %s1535_s9 }
  0xf6   : > { %440 = vrot.lane.b32.xlu0 %v1870_v9, %s1535_s9  ;;  %s1549_s9 = smov 120  }
  0xf7   : > { %412 = vrot.lane.b32.xlu1 %v1874_v11, %s1536_s8 }
  0xfa   : > { %414 = vrot.lane.b32.xlu0 %v1856_v6, %s1536_s8 }
  0xfb   : > { %427 = vrot.lane.b32.xlu1 %v1870_v9, %s1537_s6 }
  0xfe   : > { %429 = vrot.lane.b32.xlu0 %v1965_v16, %s1537_s6 }
  0xff   : > { %410 = vrot.lane.b32.xlu1 %v1870_v9, %s1536_s8  ;;  %s1550_s8 = smov 106  }
 0x102   : > { %425 = vrot.lane.b32.xlu0 %v1973_v17, %s1537_s6  ;;  %s1551_s6 = smov 118  }
 0x103   : > { %382 = vrot.lane.b32.xlu1 %v1874_v11, %s1538_s11 }
 0x104   : > { %v693_v18 = vpop.permute.xlu0 %692 }
 0x105   : > { %v689_v19 = vpop.permute.xlu1 %688  ;;  %701 = vst.msk [vmem:[#allocation2 + $0x148] sm:$0xf] %vm330_vm2, %v693_v18 }
 0x106   : > { %384 = vrot.lane.b32.xlu0 %v1856_v6, %s1538_s11 }
 0x107   : > { %397 = vrot.lane.b32.xlu1 %v1870_v9, %s1539_s30 }
 0x108   : > { %v665_v20 = vpop.permute.xlu0 %664 }
 0x109   : > { %v677_v21 = vpop.permute.xlu1 %676  ;;  %673 = vst.msk [vmem:[#allocation2 + $0x130] sm:$0xf] %vm330_vm2, %v665_v20 }
 0x10a   : > { %399 = vrot.lane.b32.xlu0 %v1965_v16, %s1539_s30 }
 0x10b   : > { %380 = vrot.lane.b32.xlu1 %v1870_v9, %s1538_s11  ;;  %s1552_s11 = smov 104  }
 0x10c   : > { %v691_v23 = vpop.permute.xlu0 %690  ;;  %v754_v24 = vld [vmem:[#allocation2 + $0x148] sm:$0xff] }
 0x10d   : > { %v663_v22 = vpop.permute.xlu1 %662  ;;  %v694_v26 = vsel %vm446_vm4, %v689_v19, %v691_v23  ;;  %v695_v27 = vsel %vm446_vm4, %v691_v23, %v693_v18  ;;  %1152 = vmatpush3.msra.mxu1 %v754_v24 }
 0x10e   : > { %v667_v25 = vsel %vm416_vm3, %v663_v22, %v665_v20  ;;  %699 = vst [vmem:[#allocation2 + $0x138] sm:$0xf] %v694_v26  ;;  %700 = vst [vmem:[#allocation2 + $0x140] sm:$0xf] %v695_v27  ;;  %395 = vrot.lane.b32.xlu0 %v1973_v17, %s1539_s30  ;;  %1153 = vmatprep.subr.mxu1 %v1534_v0 }
 0x10f   : > { %672 = vst [vmem:[#allocation2 + $0x128] sm:$0xf] %v667_v25  ;;  %352 = vrot.lane.b32.xlu1 %v1874_v11, %s1540_s13 }
 0x110   : > { %v679_v29 = vpop.permute.xlu0 %678 }
 0x111   : > { %v661_v28 = vpop.permute.xlu1 %660  ;;  %v681_v31 = vsel %vm431_vm5, %v677_v21, %v679_v29  ;;  %687 = vst.msk [vmem:[#allocation2 + $0x130] sm:$0xf0] %vm348_vm0, %v679_v29 }
 0x112   : > { %v666_v30 = vsel %vm416_vm3, %v661_v28, %v663_v22  ;;  %686 = vst [vmem:[#allocation2 + $0x128] sm:$0xf0] %v681_v31  ;;  %354 = vrot.lane.b32.xlu0 %v1856_v6, %s1540_s13 }
 0x113   : > { %671 = vst [vmem:[#allocation2 + $0x120] sm:$0xf] %v666_v30  ;;  %367 = vrot.lane.b32.xlu1 %v1870_v9, %s1541_s21 }
 0x114   : > { %v675_v33 = vpop.permute.xlu0 %674 }
 0x115   : > { %v635_v32 = vpop.permute.xlu1 %634  ;;  %v680_v34 = vsel %vm431_vm5, %v675_v33, %v677_v21  ;;  %v753_v35 = vld [vmem:[#allocation2 + $0x140] sm:$0xff]  ;;  %v752_v36 = vld [vmem:[#allocation2 + $0x138] sm:$0xff] }
 0x116   : > { %685 = vst [vmem:[#allocation2 + $0x120] sm:$0xf0] %v680_v34  ;;  %771 = vmatprep.subr.mxu0 %v753_v35  ;;  %369 = vrot.lane.b32.xlu0 %v1965_v16, %s1541_s21 }
 0x117   : > { %350 = vrot.lane.b32.xlu1 %v1870_v9, %s1540_s13  ;;  %772 = vmatpush1.msra.mxu0 %v752_v36 }
 0x118   : > { %v637_v38 = vpop.permute.xlu0 %636  ;;  %v751_v39 = vld [vmem:[#allocation2 + $0x130] sm:$0xff] }
 0x119   : > { %v649_v37 = vpop.permute.xlu1 %648  ;;  %v639_v40 = vsel %vm386_vm6, %v635_v32, %v637_v38  ;;  %645 = vst.msk [vmem:[#allocation2 + $0x118] sm:$0xf] %vm330_vm2, %v637_v38  ;;  %1154 = vmatpush3.msra.mxu1 %v751_v39  ;;  %v750_v41 = vld [vmem:[#allocation2 + $0x128] sm:$0xff] }
 0x11a   : > { %644 = vst [vmem:[#allocation2 + $0x110] sm:$0xf] %v639_v40  ;;  %773 = vmatprep.subr.mxu0 %v750_v41  ;;  %365 = vrot.lane.b32.xlu0 %v1973_v17, %s1541_s21 }
 0x11b   : > { %336 = vrot.lane.b32.xlu1 %v1870_v9, %s1542_s1  ;;  %1155 = vmatprep.subr.mxu1 %v1534_v0 }
 0x11c   : > { %v651_v43 = vpop.permute.xlu0 %650 }
 0x11d   : > { %v633_v42 = vpop.permute.xlu1 %632  ;;  %v653_v45 = vsel %vm401_vm7, %v649_v37, %v651_v43  ;;  %659 = vst.msk [vmem:[#allocation2 + $0x118] sm:$0xf0] %vm348_vm0, %v651_v43  ;;  %v749_v46 = vld [vmem:[#allocation2 + $0x120] sm:$0xff] }
 0x11e   : > { %v638_v44 = vsel %vm386_vm6, %v633_v42, %v635_v32  ;;  %658 = vst [vmem:[#allocation2 + $0x110] sm:$0xf0] %v653_v45  ;;  %774 = vmatpush1.msra.mxu0 %v749_v46  ;;  %338 = vrot.lane.b32.xlu0 %v1965_v16, %s1542_s1 }
 0x11f   : > { %643 = vst [vmem:[#allocation2 + $0x108] sm:$0xf] %v638_v44  ;;  %334 = vrot.lane.b32.xlu1 %v1973_v17, %s1542_s1  ;;  %s1554_s1 = smov 102  }
 0x120   : > { %v647_v48 = vpop.permute.xlu0 %646 }
 0x121   : > { %v607_v47 = vpop.permute.xlu1 %606  ;;  %v652_v51 = vsel %vm401_vm7, %v647_v48, %v649_v37 }
 0x122   : > { %657 = vst [vmem:[#allocation2 + $0x108] sm:$0xf0] %v652_v51  ;;  %764 = vperm.xlu0 %1316, %v761_v50  }
 0x124   : > { %v609_v53 = vpop.permute.xlu0 %608  ;;  %v748_v54 = vld [vmem:[#allocation2 + $0x118] sm:$0xff] }
 0x125   : > { %v621_v52 = vpop.permute.xlu1 %620  ;;  %v611_v55 = vsel %vm356_vm9, %v607_v47, %v609_v53  ;;  %617 = vst.msk [vmem:[#allocation2 + $0x100] sm:$0xf] %vm330_vm2, %v609_v53  ;;  %1156 = vmatpush3.msra.mxu1 %v748_v54  ;;  %v747_v56 = vld [vmem:[#allocation2 + $0x110] sm:$0xff] }
 0x126   : > { %616 = vst [vmem:[#allocation2 + $0xf8] sm:$0xf] %v611_v55  ;;  %775 = vmatprep.subr.mxu0 %v747_v56  ;;  %1157 = vmatprep.subr.mxu1 %v1534_v0 }
 0x128   : > { %v623_v58 = vpop.permute.xlu0 %622 }
 0x129   : > { %v605_v57 = vpop.permute.xlu1 %604  ;;  %v625_v60 = vsel %vm371_vm10, %v621_v52, %v623_v58  ;;  %631 = vst.msk [vmem:[#allocation2 + $0x100] sm:$0xf0] %vm348_vm0, %v623_v58  ;;  %v746_v61 = vld [vmem:[#allocation2 + $0x108] sm:$0xff] }
 0x12a   : > { %v610_v59 = vsel %vm356_vm9, %v605_v57, %v607_v47  ;;  %630 = vst [vmem:[#allocation2 + $0xf8] sm:$0xf0] %v625_v60  ;;  %776 = vmatpush1.msra.mxu0 %v746_v61 }
 0x12b   : > { %615 = vst [vmem:[#allocation2 + $0xf0] sm:$0xf] %v610_v59 }
 0x12c   : > { %v619_v63 = vpop.permute.xlu0 %618 }
 0x12d   : > { %v593_v62 = vpop.permute.xlu1 %592  ;;  %v624_v1 = vsel %vm371_vm10, %v619_v63, %v621_v52 }
 0x12e   : > { %629 = vst [vmem:[#allocation2 + $0xf0] sm:$0xf0] %v624_v1 }
 0x130   : > { %v595_v3 = vpop.permute.xlu0 %594  ;;  %v745_v4 = vld [vmem:[#allocation2 + $0x100] sm:$0xff] }
 0x131   : > { %v591_v2 = vpop.permute.xlu1 %590  ;;  %v597_v6 = vsel %vm340_vm11, %v593_v62, %v595_v3  ;;  %603 = vst.msk [vmem:[#allocation2 + $0xe8] sm:$0xf0] %vm348_vm0, %v595_v3  ;;  %1158 = vmatpush3.msra.mxu1 %v745_v4  ;;  %v744_v7 = vld [vmem:[#allocation2 + $0xf8] sm:$0xff] }
 0x132   : > { %v596_v5 = vsel %vm340_vm11, %v591_v2, %v593_v62  ;;  %602 = vst [vmem:[#allocation2 + $0xe0] sm:$0xf0] %v597_v6  ;;  %777 = vmatprep.subr.mxu0 %v744_v7  ;;  %1159 = vmatprep.subr.mxu1 %v1534_v0 }
 0x133   : > { %601 = vst [vmem:[#allocation2 + $0xd8] sm:$0xf0] %v596_v5 }
 0x134   : > { %v554_v9 = vpop.permute.xlu0 %553 }
 0x135   : > { %v556_v8 = vpop.permute.xlu1 %555  ;;  %v743_v11 = vld [vmem:[#allocation2 + $0xf0] sm:$0xff] }
 0x136   : > { %564 = vst.msk [vmem:[#allocation2 + $0xd0] sm:$0xf] %vm330_vm2, %v556_v8  ;;  %v558_v10 = vsel %vm431_vm5, %v554_v9, %v556_v8  ;;  %778 = vmatpush1.msra.mxu0 %v743_v11 }
 0x137   : > { %563 = vst [vmem:[#allocation2 + $0xc8] sm:$0xf] %v558_v10 }
 0x138   : > { %v568_v13 = vpop.permute.xlu0 %567  ;;  %v742_v14 = vld [vmem:[#allocation2 + $0xe8] sm:$0xff] }
 0x139   : > { %v570_v12 = vpop.permute.xlu1 %569  ;;  %1160 = vmatpush3.msra.mxu1 %v742_v14  ;;  %v741_v16 = vld [vmem:[#allocation2 + $0xe0] sm:$0xff] }
 0x13a   : > { %578 = vst.msk [vmem:[#allocation2 + $0xd0] sm:$0xf0] %vm348_vm0, %v570_v12  ;;  %v572_v15 = vsel %vm446_vm4, %v568_v13, %v570_v12  ;;  %v740_v17 = vld [vmem:[#allocation2 + $0xd8] sm:$0xff]  ;;  %779 = vmatprep.subr.mxu0 %v741_v16  ;;  %1161 = vmatprep.subr.mxu1 %v1534_v0 }
 0x13b   : > { %577 = vst [vmem:[#allocation2 + $0xc8] sm:$0xf0] %v572_v15  ;;  %780 = vmatpush1.msra.mxu0 %v740_v17 }
 0x13c   : > { %v552_v18 = vpop.permute.xlu0 %551 }
 0x13d   : > { %v566_v19 = vpop.permute.xlu1 %565  ;;  %v557_v20 = vsel %vm431_vm5, %v552_v18, %v554_v9 }
 0x13e   : > { %v571_v21 = vsel %vm446_vm4, %v566_v19, %v568_v13  ;;  %562 = vst [vmem:[#allocation2 + $0xc0] sm:$0xf] %v557_v20 }
 0x13f   : > { %576 = vst [vmem:[#allocation2 + $0xc0] sm:$0xf0] %v571_v21 }
 0x140   : > { %v526_v22 = vpop.permute.xlu0 %525 }
 0x141   : > { %v528_v23 = vpop.permute.xlu1 %527  ;;  %v739_v24 = vld [vmem:[#allocation2 + $0xd0] sm:$0xff] }
 0x142   : > { %v530_v25 = vsel %vm401_vm7, %v526_v22, %v528_v23  ;;  %536 = vst.msk [vmem:[#allocation2 + $0xb8] sm:$0xf] %vm330_vm2, %v528_v23  ;;  %1162 = vmatpush3.msra.mxu1 %v739_v24  ;;  %v738_v26 = vld [vmem:[#allocation2 + $0xc8] sm:$0xff] }
 0x143   : > { %535 = vst [vmem:[#allocation2 + $0xb0] sm:$0xf] %v530_v25  ;;  %781 = vmatprep.subr.mxu0 %v738_v26  ;;  %1163 = vmatprep.subr.mxu1 %v1534_v0 }
 0x144   : > { %v540_v27 = vpop.permute.xlu0 %539 }
 0x145   : > { %v542_v28 = vpop.permute.xlu1 %541 }
 0x146   : > { %v544_v29 = vsel %vm416_vm3, %v540_v27, %v542_v28  ;;  %550 = vst.msk [vmem:[#allocation2 + $0xb8] sm:$0xf0] %vm348_vm0, %v542_v28  ;;  %v737_v30 = vld [vmem:[#allocation2 + $0xc0] sm:$0xff] }
 0x147   : > { %549 = vst [vmem:[#allocation2 + $0xb0] sm:$0xf0] %v544_v29  ;;  %782 = vmatpush1.msra.mxu0 %v737_v30 }
 0x148   : > { %v524_v31 = vpop.permute.xlu0 %523 }
 0x149   : > { %v538_v32 = vpop.permute.xlu1 %537  ;;  %v529_v33 = vsel %vm401_vm7, %v524_v31, %v526_v22 }
 0x14a   : > { %v543_v34 = vsel %vm416_vm3, %v538_v32, %v540_v27  ;;  %534 = vst [vmem:[#allocation2 + $0xa8] sm:$0xf] %v529_v33 }
 0x14b   : > { %548 = vst [vmem:[#allocation2 + $0xa8] sm:$0xf0] %v543_v34 }
 0x14c   : > { %v498_v35 = vpop.permute.xlu0 %497 }
 0x14d   : > { %v500_v36 = vpop.permute.xlu1 %499  ;;  %v736_v37 = vld [vmem:[#allocation2 + $0xb8] sm:$0xff] }
 0x14e   : > { %v502_v38 = vsel %vm371_vm10, %v498_v35, %v500_v36  ;;  %508 = vst.msk [vmem:[#allocation2 + $0xa0] sm:$0xf] %vm330_vm2, %v500_v36  ;;  %1164 = vmatpush3.msra.mxu1 %v736_v37  ;;  %v735_v39 = vld [vmem:[#allocation2 + $0xb0] sm:$0xff] }
 0x14f   : > { %507 = vst [vmem:[#allocation2 + $0x98] sm:$0xf] %v502_v38  ;;  %783 = vmatprep.subr.mxu0 %v735_v39  ;;  %1165 = vmatprep.subr.mxu1 %v1534_v0 }
 0x150   : > { %v512_v40 = vpop.permute.xlu0 %511 }
 0x151   : > { %v514_v41 = vpop.permute.xlu1 %513 }
 0x152   : > { %v516_v42 = vsel %vm386_vm6, %v512_v40, %v514_v41  ;;  %522 = vst.msk [vmem:[#allocation2 + $0xa0] sm:$0xf0] %vm348_vm0, %v514_v41  ;;  %v734_v43 = vld [vmem:[#allocation2 + $0xa8] sm:$0xff] }
 0x153   : > { %521 = vst [vmem:[#allocation2 + $0x98] sm:$0xf0] %v516_v42  ;;  %784 = vmatpush1.msra.mxu0 %v734_v43 }
 0x154   : > { %v496_v44 = vpop.permute.xlu0 %495 }
 0x155   : > { %v510_v45 = vpop.permute.xlu1 %509  ;;  %v501_v46 = vsel %vm371_vm10, %v496_v44, %v498_v35 }
 0x156   : > { %v515_v47 = vsel %vm386_vm6, %v510_v45, %v512_v40  ;;  %506 = vst [vmem:[#allocation2 + $0x90] sm:$0xf] %v501_v46 }
 0x157   : > { %520 = vst [vmem:[#allocation2 + $0x90] sm:$0xf0] %v515_v47 }
 0x158   : > { %v470_v48 = vpop.permute.xlu0 %469 }
 0x159   : > { %v472_v49 = vpop.permute.xlu1 %471  ;;  %v733_v50 = vld [vmem:[#allocation2 + $0xa0] sm:$0xff] }
 0x15a   : > { %v474_v51 = vsel %vm340_vm11, %v470_v48, %v472_v49  ;;  %480 = vst.msk [vmem:[#allocation2 + $0x88] sm:$0xf] %vm330_vm2, %v472_v49  ;;  %1166 = vmatpush3.msra.mxu1 %v733_v50  ;;  %v732_v52 = vld [vmem:[#allocation2 + $0x98] sm:$0xff] }
 0x15b   : > { %479 = vst [vmem:[#allocation2 + $0x80] sm:$0xf] %v474_v51  ;;  %785 = vmatprep.subr.mxu0 %v732_v52  ;;  %1167 = vmatprep.subr.mxu1 %v1534_v0 }
 0x15c   : > { %v484_v53 = vpop.permute.xlu0 %483 }
 0x15d   : > { %v486_v54 = vpop.permute.xlu1 %485 }
 0x15e   : > { %v488_v55 = vsel %vm356_vm9, %v484_v53, %v486_v54  ;;  %494 = vst.msk [vmem:[#allocation2 + $0x88] sm:$0xf0] %vm348_vm0, %v486_v54  ;;  %v731_v56 = vld [vmem:[#allocation2 + $0x90] sm:$0xff] }
 0x15f   : > { %493 = vst [vmem:[#allocation2 + $0x80] sm:$0xf0] %v488_v55  ;;  %786 = vmatpush1.msra.mxu0 %v731_v56 }
 0x160   : > { %v468_v57 = vpop.permute.xlu0 %467 }
 0x161   : > { %v482_v58 = vpop.permute.xlu1 %481  ;;  %v473_v59 = vsel %vm340_vm11, %v468_v57, %v470_v48 }
 0x162   : > { %v487_v60 = vsel %vm356_vm9, %v482_v58, %v484_v53  ;;  %478 = vst [vmem:[#allocation2 + $0x78] sm:$0xf] %v473_v59  ;;  %v712_v53 = vld [vmem:[%s2199_s3] sm:$0xff] }
 0x163   : > { %492 = vst [vmem:[#allocation2 + $0x78] sm:$0xf0] %v487_v60 }
 0x164   : > { %v443_v62 = vpop.permute.xlu0 %442 }
 0x165   : > { %v445_v61 = vpop.permute.xlu1 %444  ;;  %v730_v63 = vld [vmem:[#allocation2 + $0x88] sm:$0xff] }
 0x166   : > { %454 = vst.msk [vmem:[#allocation2 + $0x70] sm:$0xf] %vm330_vm2, %v445_v61  ;;  %v448_v1 = vsel %vm446_vm4, %v443_v62, %v445_v61  ;;  %1168 = vmatpush3.msra.mxu1 %v730_v63  ;;  %v729_v2 = vld [vmem:[#allocation2 + $0x80] sm:$0xff] }
 0x167   : > { %453 = vst [vmem:[#allocation2 + $0x68] sm:$0xf] %v448_v1  ;;  %787 = vmatprep.subr.mxu0 %v729_v2  ;;  %1169 = vmatprep.subr.mxu1 %v1534_v0 }
 0x168   : > { %v441_v4 = vpop.permute.xlu0 %440 }
 0x169   : > { %v413_v3 = vpop.permute.xlu1 %412  ;;  %v447_v5 = vsel %vm446_vm4, %v441_v4, %v443_v62  ;;  %vm949_vm4 = vcmask 1048448  }
 0x16a   : > { %v728_v6 = vld [vmem:[#allocation2 + $0x78] sm:$0xff]  ;;  %452 = vst [vmem:[#allocation2 + $0x60] sm:$0xf] %v447_v5 }
 0x16b   : > { %788 = vmatpush1.msra.mxu0 %v728_v6 }
 0x16c   : > { %v415_v8 = vpop.permute.xlu0 %414 }
 0x16d   : > { %v428_v7 = vpop.permute.xlu1 %427  ;;  %v727_v9 = vld [vmem:[#allocation2 + $0x70] sm:$0xff]  ;;  %v418_v10 = vsel %vm416_vm3, %v413_v3, %v415_v8  ;;  %424 = vst.msk [vmem:[#allocation2 + $0x58] sm:$0xf] %vm330_vm2, %v415_v8 }
 0x16e   : > { %v726_v11 = vld [vmem:[#allocation2 + $0x68] sm:$0xff]  ;;  %1170 = vmatpush3.msra.mxu1 %v727_v9  ;;  %423 = vst [vmem:[#allocation2 + $0x50] sm:$0xf] %v418_v10 }
 0x16f   : > { %789 = vmatprep.subr.mxu0 %v726_v11  ;;  %1171 = vmatprep.subr.mxu1 %v1534_v0 }
 0x170   : > { %v430_v13 = vpop.permute.xlu0 %429 }
 0x171   : > { %v411_v12 = vpop.permute.xlu1 %410  ;;  %v433_v15 = vsel %vm431_vm5, %v428_v7, %v430_v13  ;;  %439 = vst.msk [vmem:[#allocation2 + $0x58] sm:$0xf0] %vm348_vm0, %v430_v13  ;;  %v725_v16 = vld [vmem:[#allocation2 + $0x60] sm:$0xff] }
 0x172   : > { %v417_v14 = vsel %vm416_vm3, %v411_v12, %v413_v3  ;;  %438 = vst [vmem:[#allocation2 + $0x50] sm:$0xf0] %v433_v15  ;;  %790 = vmatpush1.msra.mxu0 %v725_v16  ;;  %vm980_vm3 = vcmask 818176  }
 0x173   : > { %422 = vst [vmem:[#allocation2 + $0x48] sm:$0xf] %v417_v14 }
 0x174   : > { %v426_v18 = vpop.permute.xlu0 %425 }
 0x175   : > { %v383_v17 = vpop.permute.xlu1 %382  ;;  %v432_v19 = vsel %vm431_vm5, %v426_v18, %v428_v7  ;;  %vm946_vm5 = vcmask 932864  }
 0x176   : > { %437 = vst [vmem:[#allocation2 + $0x48] sm:$0xf0] %v432_v19 }
 0x178   : > { %v385_v21 = vpop.permute.xlu0 %384  ;;  %v724_v22 = vld [vmem:[#allocation2 + $0x58] sm:$0xff] }
 0x179   : > { %v398_v20 = vpop.permute.xlu1 %397  ;;  %v388_v23 = vsel %vm386_vm6, %v383_v17, %v385_v21  ;;  %394 = vst.msk [vmem:[#allocation2 + $0x40] sm:$0xf] %vm330_vm2, %v385_v21  ;;  %1172 = vmatpush3.msra.mxu1 %v724_v22  ;;  %v723_v24 = vld [vmem:[#allocation2 + $0x50] sm:$0xff] }
 0x17a   : > { %393 = vst [vmem:[#allocation2 + $0x38] sm:$0xf] %v388_v23  ;;  %791 = vmatprep.subr.mxu0 %v723_v24  ;;  %1173 = vmatprep.subr.mxu1 %v1534_v0 }
 0x17c   : > { %v400_v26 = vpop.permute.xlu0 %399 }
 0x17d   : > { %v381_v25 = vpop.permute.xlu1 %380  ;;  %v403_v28 = vsel %vm401_vm7, %v398_v20, %v400_v26  ;;  %409 = vst.msk [vmem:[#allocation2 + $0x40] sm:$0xf0] %vm348_vm0, %v400_v26  ;;  %v722_v29 = vld [vmem:[#allocation2 + $0x48] sm:$0xff] }
 0x17e   : > { %v387_v27 = vsel %vm386_vm6, %v381_v25, %v383_v17  ;;  %408 = vst [vmem:[#allocation2 + $0x38] sm:$0xf0] %v403_v28  ;;  %792 = vmatpush1.msra.mxu0 %v722_v29 }
 0x17f   : > { %392 = vst [vmem:[#allocation2 + $0x30] sm:$0xf] %v387_v27 }
 0x180   : > { %v396_v31 = vpop.permute.xlu0 %395 }
 0x181   : > { %v353_v30 = vpop.permute.xlu1 %352  ;;  %v402_v32 = vsel %vm401_vm7, %v396_v31, %v398_v20 }
 0x182   : > { %407 = vst [vmem:[#allocation2 + $0x30] sm:$0xf0] %v402_v32 }
 0x184   : > { %v355_v34 = vpop.permute.xlu0 %354  ;;  %v721_v35 = vld [vmem:[#allocation2 + $0x40] sm:$0xff] }
 0x185   : > { %v368_v33 = vpop.permute.xlu1 %367  ;;  %v358_v36 = vsel %vm356_vm9, %v353_v30, %v355_v34  ;;  %364 = vst.msk [vmem:[#allocation2 + $0x28] sm:$0xf] %vm330_vm2, %v355_v34  ;;  %1174 = vmatpush3.msra.mxu1 %v721_v35  ;;  %v720_v37 = vld [vmem:[#allocation2 + $0x38] sm:$0xff]  ;;  %vm939_vm2 = vcmask 917248  }
 0x186   : > { %363 = vst [vmem:[#allocation2 + $0x20] sm:$0xf] %v358_v36  ;;  %793 = vmatprep.subr.mxu0 %v720_v37  ;;  %1175 = vmatprep.subr.mxu1 %v1534_v0 }
 0x188   : > { %v370_v40 = vpop.permute.xlu0 %369 }
 0x189   : > { %v351_v38 = vpop.permute.xlu1 %350  ;;  %v719_v41 = vld [vmem:[#allocation2 + $0x30] sm:$0xff]  ;;  %v373_v42 = vsel %vm371_vm10, %v368_v33, %v370_v40  ;;  %379 = vst.msk [vmem:[#allocation2 + $0x28] sm:$0xf0] %vm348_vm0, %v370_v40 }
 0x18a   : > { %v357_v39 = vsel %vm356_vm9, %v351_v38, %v353_v30  ;;  %794 = vmatpush1.msra.mxu0 %v719_v41  ;;  %378 = vst [vmem:[#allocation2 + $0x20] sm:$0xf0] %v373_v42 }
 0x18b   : > { %362 = vst [vmem:[#allocation2 + $0x18] sm:$0xf] %v357_v39 }
 0x18c   : > { %v366_v44 = vpop.permute.xlu0 %365 }
 0x18d   : > { %v337_v43 = vpop.permute.xlu1 %336  ;;  %v372_v45 = vsel %vm371_vm10, %v366_v44, %v368_v33 }
 0x18e   : > { %377 = vst [vmem:[#allocation2 + $0x18] sm:$0xf0] %v372_v45 }
 0x190   : > { %v339_v48 = vpop.permute.xlu0 %338  ;;  %v718_v49 = vld [vmem:[#allocation2 + $0x28] sm:$0xff] }
 0x191   : > { %v335_v46 = vpop.permute.xlu1 %334  ;;  %v342_v50 = vsel %vm340_vm11, %v337_v43, %v339_v48  ;;  %349 = vst.msk [vmem:[#allocation2 + $0x10] sm:$0xf0] %vm348_vm0, %v339_v48  ;;  %1176 = vmatpush3.msra.mxu1 %v718_v49  ;;  %v717_v51 = vld [vmem:[#allocation2 + $0x20] sm:$0xff]  ;;  %vm929_vm0 = vcmask 654848  }
 0x192   : > { %v341_v47 = vsel %vm340_vm11, %v335_v46, %v337_v43  ;;  %347 = vst [vmem:[#allocation2 + $0x8] sm:$0xf0] %v342_v50  ;;  %795 = vmatprep.subr.mxu0 %v717_v51  ;;  %1177 = vmatprep.subr.mxu1 %v1534_v0 }
 0x193   : > { %346 = vst [vmem:[#allocation2] sm:$0xf0] %v341_v47 }
 0x195   : > { %v716_v52 = vld [vmem:[#allocation2 + $0x18] sm:$0xff] }
 0x196   : > { %796 = vmatpush1.msra.mxu0 %v716_v52 }
 0x198   : > { %v715_v54 = vld [vmem:[#allocation2 + $0x10] sm:$0xff] }
 0x199   : > { %1178 = vmatpush3.msra.mxu1 %v715_v54  ;;  %v714_v56 = vld [vmem:[#allocation2 + $0x8] sm:$0xff] }
 0x19a   : > { %v713_v55 = vld [vmem:[#allocation2] sm:$0xff]  ;;  %797 = vmatprep.subr.mxu0 %v714_v56  ;;  %1180 = vmatmul.mubr.f32.vlgmr.msra.gmra.mxu1 %v712_v53 }
 0x19b   : > { %798 = vmatpush1.msra.mxu0 %v713_v55 }
 0x19c   : > { %832 = vmatmul.mubr.f32.vlgmr.msra.gmra.mxu0 %v712_v53 }
 0x19d   : > { %v765_v57 = vpop.permute.xlu0 %764 }
 0x25a   : > { %v904_v58 = vpop.f32.mrf.mxu1 }
 0x25b   : > { %v905_v59 = vadd.f32 %v904_v58, %v765_v57 }
 0x25c   : > { %v833_v60 = vpop.f32.mrf.mxu0  ;;  %v1181_v0 = vpop.f32.mrf.mxu1 }
 0x25d   : > { %v834_v61 = vadd.f32 %v833_v60, %v765_v57  ;;  %978 = vrot.lane.b32.xlu0 %v905_v59, %s1545_s18 }
 0x25e   : > { %v835_v62 = vpop.f32.mrf.mxu0 }
 0x25f   : > { %911 = vrot.lane.b32.xlu1 %v834_v61, %s1540_s13  ;;  %909 = vst.msk [vmem:[%s2102_s23] sm:$0xff] %vm908_vm12, %v834_v61  ;;  %v836_v63 = vadd.f32 %v835_v62, %v765_v57  ;;  %s1553_s13 = smov 116  }
 0x261   : > { %942 = vrot.lane.b32.xlu0 %v834_v61, %s1546_s26 }
 0x263   : > { %916 = vrot.lane.b32.xlu1 %v834_v61, %s1547_s17 }
 0x265   : > { %955 = vrot.lane.b32.xlu0 %v836_v63, %s1541_s21  ;;  %s1556_s21 = smov 98  }
 0x267   : > { %921 = vrot.lane.b32.xlu1 %v834_v61, %s1548_s12  ;;  %s989_s12 = scalar_lea.sflag [#allocation5], %s1808_s14 }
 0x269   : > { %959 = vrot.lane.b32.xlu0 %v836_v63, %s1539_s30  ;;  %s2247_s30 = sld [smem:[#allocation19_spill]] }
 0x26b   : > { %926 = vrot.lane.b32.xlu1 %v834_v61, %s1549_s9  ;;  %s1409_s9 = scalar_lea.vmem %s1004_s7, 256 }
 0x26c   : > { %p1410_p12 = scmp.ne.s32.totalorder %s1004_s7, %s1409_s9 }
 0x26d   : > { %963 = vrot.lane.b32.xlu0 %v836_v63, %s1550_s8  ;;  %s1413_s8 = sshll.u32 %s1557_s28, 4  ;;  %s1414_s8 = int_to_ptr.vmem [resolvable:$false] %s1413_s8 }
 0x26e   : > { %p1416_p13 = scmp.lt.s32.totalorder %s1004_s7, %s1414_s8 }
 0x26f   : > { %931 = vrot.lane.b32.xlu1 %v834_v61, %s1551_s6  ;;  %p2250_p6 = scmp.ne.s32.totalorder %s2247_s30, 0  ;;  %s1415_s6 = scalar_lea.vmem %s1414_s8, 512 }
 0x270   : > { %p1417_p9 = scmp.lt.s32.totalorder %s1415_s6, %s1409_s9 }
 0x271   : > { %967 = vrot.lane.b32.xlu0 %v836_v63, %s1552_s11  ;;  %p1411_p8 = pnand %p1410_p12, %p2250_p6 }
 0x272   : > { %p1418_p10 = por %p1417_p9, %p1416_p13 }
 0x273   : > { %936 = vrot.lane.b32.xlu1 %v834_v61, %s1553_s13  ;;  %p1412_p5 = pneg %p1411_p8 }
 0x275   : > { %971 = vrot.lane.b32.xlu0 %v836_v63, %s1554_s1  ;;  %p1419_p1 = pnand %p1418_p10, %p1412_p5 }
 0x277   : > { %951 = vrot.lane.b32.xlu1 %v836_v63, %s1555_s10 }
 0x279   : > { %984 = vrot.lane.b32.xlu0 %v905_v59, %s1556_s21 }
 0x27b   : > { %976 = vrot.lane.b32.xlu1 %v836_v63, %s1545_s18  ;;  %s2248_s18 = sld [smem:[#allocation22_spill]] }
 0x27f   : > { %944 = vrot.lane.b32.xlu1 %v836_v63, %s1546_s26 }
 0x281   : > { %s2249_s17 = smov %s2248_s18  ;;  %s2141_s26 = scalar_lea.hbm %s2248_s18, %s1129_s24 }
 0x2cf   : > { %v979_v1 = vpop.permute.xlu0 %978 }
 0x2d1   : > { %v912_v2 = vpop.permute.xlu1 %911 }
 0x2d2   : > { %915 = vst.msk [vmem:[%s2102_s23] sm:$0xff] %vm914_vm13, %v912_v2 }
 0x2d3   : > { %v943_v3 = vpop.permute.xlu0 %942 }
 0x2d5   : > { %v917_v4 = vpop.permute.xlu1 %916 }
 0x2d6   : > { %920 = vst.msk [vmem:[%s2102_s23] sm:$0xff] %vm919_vm14, %v917_v4 }
 0x2d7   : > { %v956_v5 = vpop.permute.xlu0 %955 }
 0x2d9   : > { %v922_v6 = vpop.permute.xlu1 %921 }
 0x2da   : > { %925 = vst.msk [vmem:[%s2102_s23] sm:$0xff] %vm924_vm15, %v922_v6 }
 0x2db   : > { %v960_v7 = vpop.permute.xlu0 %959 }
 0x2dd   : > { %v927_v8 = vpop.permute.xlu1 %926 }
 0x2de   : > { %930 = vst.msk [vmem:[%s2102_s23] sm:$0xff] %vm929_vm0, %v927_v8 }
 0x2df   : > { %v964_v9 = vpop.permute.xlu0 %963 }
 0x2e1   : > { %v932_v10 = vpop.permute.xlu1 %931 }
 0x2e2   : > { %935 = vst.msk [vmem:[%s2102_s23] sm:$0xff] %vm934_vm1, %v932_v10 }
 0x2e3   : > { %v968_v11 = vpop.permute.xlu0 %967 }
 0x2e5   : > { %v937_v12 = vpop.permute.xlu1 %936 }
 0x2e6   : > { %940 = vst.msk [vmem:[%s2102_s23] sm:$0xff] %vm939_vm2, %v937_v12 }
 0x2e7   : > { %v972_v14 = vpop.permute.xlu0 %971 }
 0x2e9   : > { %v952_v13 = vpop.permute.xlu1 %951 }
 0x2ea   : > { %954 = vst.msk [vmem:[%s2102_s23 + $0x8] sm:$0xff] %vm908_vm12, %v952_v13 }
 0x2eb   : > { %958 = vst.msk [vmem:[%s2102_s23 + $0x8] sm:$0xff] %vm914_vm13, %v956_v5  ;;  %v985_v17 = vpop.permute.xlu0 %984 }
 0x2ec   : > { %962 = vst.msk [vmem:[%s2102_s23 + $0x8] sm:$0xff] %vm919_vm14, %v960_v7 }
 0x2ed   : > { %966 = vst.msk [vmem:[%s2102_s23 + $0x8] sm:$0xff] %vm924_vm15, %v964_v9  ;;  %v977_v15 = vpop.permute.xlu1 %976 }
 0x2ee   : > { %970 = vst.msk [vmem:[%s2102_s23 + $0x8] sm:$0xff] %vm929_vm0, %v968_v11  ;;  %v981_v16 = vsel %vm980_vm3, %v977_v15, %v979_v1 }
 0x2ef   : > { %974 = vst.msk [vmem:[%s2102_s23 + $0x8] sm:$0xff] %vm934_vm1, %v972_v14 }
 0x2f0   : > { %983 = vst.msk [vmem:[%s2102_s23 + $0x8] sm:$0xff] %vm939_vm2, %v981_v16 }
 0x2f1   : > { %v945_v18 = vpop.permute.xlu1 %944  ;;  %987 = vst.msk [vmem:[%s2102_s23 + $0x8] sm:$0xff] %vm949_vm4, %v985_v17 }
 0x2f2   : > { %v947_v19 = vsel %vm946_vm5, %v943_v3, %v945_v18 }
 0x2f3   : > { %950 = vst.msk [vmem:[%s2102_s23] sm:$0xff] %vm949_vm4, %v947_v19 }
 0x2f4   : > { %1422 = shalt.err (!%p1419_p1)
}
 0x2f5   : > { %s1423_s23 = scalar_lea.hbm %s2141_s26, 256  ;;  %s1427_s13 = scalar_lea.hbm %s2249_s17, 2048 }
 0x2f6   : > { %p1424_p4 = scmp.ne.s32.totalorder %s2141_s26, %s1423_s23  ;;  %p1428_p11 = scmp.lt.s32.totalorder %s2141_s26, %s2249_s17 }
 0x2f7   : > { %p1429_p2 = scmp.lt.s32.totalorder %s1427_s13, %s1423_s23 }
 0x2f8   : > { %p1425_p0 = pnand %p1424_p4, %p2250_p6 }
 0x2f9   : > { %p1430_p3 = por %p1429_p2, %p1428_p11 }
 0x2fa   : > { %p1426_p7 = pneg %p1425_p0 }
 0x2fc   : > { %p1431_p12 = pnand %p1430_p3, %p1426_p7 }
 0x2fe   : > { %1434 = shalt.err (!%p1431_p12)
}
 0x2ff   : > { %1195 = dma.vmem_to_hbm [thread:$0]  (%p2250_p6), %s1004_s7, 256, %s2141_s26, %s989_s12  }
 0x300 PF: > { %s2251_s21 = sld [smem:[#allocation15_spill]]  ;;  %p1212_p8 = scmp.ge.s32.totalorder %s1529_s27, 2 }
 0x301   : > { %s2252_s24 = sld [smem:[#allocation20_spill]] }
 0x306   : > { %s1015_s5 = sand.u32 1, %s2251_s21  }
 0x307   : > { %p2253_p5 = scmp.ne.s32.totalorder %s2252_s24, 0  ;;  %s1016_s15 = scalar_lea.sflag [#allocation5], %s1015_s5 }
 0x309   : > { %p1208_p13 = pnand %p1212_p8, %p2253_p5 }
 0x30b   : > { %p1209_p9 = pneg %p1208_p13 }
 0x30d   : > { %1488 = dma.done.wait (%p1209_p9), %s1016_s15, 256  }
 0x30e   : > { %1490 = vsyncadd (%p1209_p9), %s1016_s15, 4294967040  ;;  %s2254_s30 = sld [smem:[#allocation14_spill]]  ;;  %p21_p6 = scmp.ge.s32.totalorder %s1640_s29, 10  }
 0x30f   : > { %s2255_s23 = sld [smem:[#allocation17_spill]]  ;;  %s2258_s18 = smov %s1497_s19 }
 0x310   : > { %s2256_s7 = sld [smem:[#allocation16_spill]]  ;;  %s2259_s19 = smov %s1501_s20 }
 0x311   : > { %s2257_s26 = sld [smem:[#allocation18_spill]]  ;;  %s2260_s20 = smov %s1769_s16 }
 0x312   : > { %s2261_s21 = smov %s1509_s22  ;;  %s2263_s24 = smov %s1521_s25 }
 0x313   : > { %s2265_s27 = smov %s1640_s29  ;;  %23 = sbr.rel (!%p21_p6) target bundleno = 13 (0xd), region = 109 }
 0x314   : > { %s2262_s22 = smov %s2254_s30 }
 0x316   : > { %s2264_s25 = smov %s2256_s7 }
 0x318   :  { %1021 = vsyncpa [#allocation4], 1 }
 0x319   :  { %1023 = vsyncpa [#allocation4 + $0x1], 1 }
 0x31a   :  { %1024 = vsyncpa [#allocation7], 1 }
 0x31b   :  { %1026 = vsyncpa [#allocation7 + $0x1], 1 }
 0x31c   :  { %1027 = vsyncpa [#allocation5], 1 }
 0x31d   :  { %1029 = vsyncpa [#allocation5 + $0x1], 1 }

</bundles_post_ra>
